<compile_context>
chip_gen: v6e
topology: v6e:2x2x1
jax: 0.10.0
libtpu: 0.0.40
codegen_flags: <defaults>
</compile_context>

<pallas_src>
import functools

import jax
import jax.numpy as jnp
from jax.experimental import pallas as pl
from jax.experimental.pallas import tpu as pltpu

# Explicit scoped-VMEM budget: fits v7x's 64 MiB/TC with headroom, fine on v5e/v6e (128 MiB).
_VMEM_LIMIT_BYTES = 48 * 1024 * 1024
_NEG_INF = -1e30  # large finite value -> no NaN from exp(-inf - -inf)


def _pick_tile(dim, target, mult):
    """Largest tile <= target that divides `dim` and is a multiple of `mult`; otherwise fall
    back to the full dim (a full-extent block is always legal w.r.t. the (8/16,128) rule)."""
    if dim <= target:
        return dim
    t = (target // mult) * mult
    while t >= mult:
        if dim % t == 0:
            return t
        t -= mult
    return dim


# ----------------------------------------------------------------------------- linear (matmul)

def _linear_kernel(x_ref, w_ref, b_ref, o_ref, acc_ref, *, activation):
    @pl.when(pl.program_id(2) == 0)
    def _():
        acc_ref[...] = jnp.zeros_like(acc_ref)

    acc_ref[...] += jnp.dot(x_ref[...], w_ref[...], preferred_element_type=jnp.float32)

    @pl.when(pl.program_id(2) == pl.num_programs(2) - 1)
    def _():
        y = acc_ref[...] + b_ref[...].astype(jnp.float32)
        if activation == "gelu":
            y = jax.nn.gelu(y)
        o_ref[...] = y.astype(o_ref.dtype)


def _linear_residual_kernel(x_ref, w_ref, b_ref, r_ref, o_ref, acc_ref):
    @pl.when(pl.program_id(2) == 0)
    def _():
        acc_ref[...] = jnp.zeros_like(acc_ref)

    acc_ref[...] += jnp.dot(x_ref[...], w_ref[...], preferred_element_type=jnp.float32)

    @pl.when(pl.program_id(2) == pl.num_programs(2) - 1)
    def _():
        y = acc_ref[...] + b_ref[...].astype(jnp.float32) + r_ref[...].astype(jnp.float32)
        o_ref[...] = y.astype(o_ref.dtype)


def linear_pallas(x2d, w, b, *, residual=None, activation=None, out_dtype=None,
                  tm_target=256, tn_target=256, tk_target=512):
    """y = act(x @ w + b) (+ residual).   x2d: [M, K] bf16, w: [K, N] bf16, b: [N] f32."""
    M, K = x2d.shape
    K2, N = w.shape
    assert K == K2
    out_dtype = out_dtype or x2d.dtype

    tm = _pick_tile(M, tm_target, 16)    # bf16 sublane packing -> multiple of 16
    tn = _pick_tile(N, tn_target, 128)   # lane-dense output tiles
    tk = _pick_tile(K, tk_target, 128)
    grid = (M // tm, N // tn, K // tk)

    in_specs = [
        pl.BlockSpec((tm, tk), lambda i, j, k: (i, k)),
        pl.BlockSpec((tk, tn), lambda i, j, k: (k, j)),
        pl.BlockSpec((1, tn), lambda i, j, k: (0, j)),
    ]
    args = [x2d, w, b.reshape(1, N)]
    if residual is not None:
        kernel = _linear_residual_kernel
        in_specs.append(pl.BlockSpec((tm, tn), lambda i, j, k: (i, j)))
        args.append(residual)
    else:
        kernel = functools.partial(_linear_kernel, activation=activation)

    return pl.pallas_call(
        kernel,
        out_shape=jax.ShapeDtypeStruct((M, N), out_dtype),
        grid_spec=pltpu.PrefetchScalarGridSpec(
            num_scalar_prefetch=0,
            grid=grid,
            in_specs=in_specs,
            out_specs=pl.BlockSpec((tm, tn), lambda i, j, k: (i, j)),
            scratch_shapes=[pltpu.VMEM((tm, tn), jnp.float32)],
        ),
        compiler_params=pltpu.CompilerParams(
            dimension_semantics=("parallel", "parallel", "arbitrary"),
            vmem_limit_bytes=_VMEM_LIMIT_BYTES,
        ),
    )(*args)


# ----------------------------------------------------------------------------- RMSNorm

def _rmsnorm_kernel(x_ref, w_ref, o_ref, *, eps):
    x = x_ref[...].astype(jnp.float32)
    ms = jnp.mean(x * x, axis=-1, keepdims=True)
    inv = jax.lax.rsqrt(ms + eps)
    o_ref[...] = (x * inv * w_ref[...].astype(jnp.float32)).astype(o_ref.dtype)


def rmsnorm_pallas(x2d, w, eps, tm_target=256):
    """x2d: [M, D] bf16, w: [D] f32  ->  [M, D] bf16."""
    M, D = x2d.shape
    tm = _pick_tile(M, tm_target, 16)
    return pl.pallas_call(
        functools.partial(_rmsnorm_kernel, eps=eps),
        out_shape=jax.ShapeDtypeStruct((M, D), x2d.dtype),
        grid_spec=pltpu.PrefetchScalarGridSpec(
            num_scalar_prefetch=0,
            grid=(M // tm,),
            in_specs=[
                pl.BlockSpec((tm, D), lambda i: (i, 0)),
                pl.BlockSpec((1, D), lambda i: (0, 0)),
            ],
            out_specs=pl.BlockSpec((tm, D), lambda i: (i, 0)),
        ),
        compiler_params=pltpu.CompilerParams(
            dimension_semantics=("parallel",),
            vmem_limit_bytes=_VMEM_LIMIT_BYTES,
        ),
    )(x2d, w.reshape(1, D))


# ----------------------------------------------------------------------------- flash attention

def _flash_attn_kernel(q_ref, k_ref, v_ref, o_ref, m_sc, l_sc, acc_sc, *, scale, tq, tk):
    qi = pl.program_id(1)
    ki = pl.program_id(2)

    @pl.when(ki == 0)
    def _():
        m_sc[...] = jnp.full_like(m_sc, _NEG_INF)
        l_sc[...] = jnp.zeros_like(l_sc)
        acc_sc[...] = jnp.zeros_like(acc_sc)

    q_start = qi * tq
    k_start = ki * tk

    # Skip KV tiles that lie entirely above the causal diagonal.
    @pl.when(k_start <= q_start + tq - 1)
    def _():
        q = q_ref[0]                                     # (tq, Dh) bf16
        k = k_ref[0]                                     # (tk, Dh) bf16
        # contract last dims directly -- no explicit k.T / XLU transpose
        s = jax.lax.dot_general(q, k, (((1,), (1,)), ((), ())),
                                preferred_element_type=jnp.float32) * scale
        rows = q_start + jax.lax.broadcasted_iota(jnp.int32, (tq, tk), 0)
        cols = k_start + jax.lax.broadcasted_iota(jnp.int32, (tq, tk), 1)
        s = jnp.where(cols <= rows, s, _NEG_INF)         # in-kernel causal mask

        m_prev = m_sc[...]
        m_new = jnp.maximum(m_prev, jnp.max(s, axis=-1, keepdims=True))
        alpha = jnp.exp(m_prev - m_new)
        p = jnp.exp(s - m_new)
        l_sc[...] = alpha * l_sc[...] + jnp.sum(p, axis=-1, keepdims=True)
        acc_sc[...] = alpha * acc_sc[...] + jnp.dot(
            p.astype(v_ref.dtype), v_ref[0], preferred_element_type=jnp.float32)
        m_sc[...] = m_new

    @pl.when(ki == pl.num_programs(2) - 1)
    def _():
        inv = pl.reciprocal(l_sc[...], approx=True)      # EUP slot, nearly free
        o_ref[0] = (acc_sc[...] * inv).astype(o_ref.dtype)


def attention_pallas(q, k, v, *, tq_target=256, tk_target=256):
    """q, k, v: [B*H, L, Dh] bf16  ->  [B*H, L, Dh] bf16 causal attention (online softmax)."""
    BH, L, Dh = q.shape
    scale = 1.0 / (Dh ** 0.5)
    tq = _pick_tile(L, tq_target, 16)
    tk = _pick_tile(L, tk_target, 16)
    grid = (BH, L // tq, L // tk)
    return pl.pallas_call(
        functools.partial(_flash_attn_kernel, scale=scale, tq=tq, tk=tk),
        out_shape=jax.ShapeDtypeStruct((BH, L, Dh), q.dtype),
        grid_spec=pltpu.PrefetchScalarGridSpec(
            num_scalar_prefetch=0,
            grid=grid,
            in_specs=[
                pl.BlockSpec((1, tq, Dh), lambda b, i, j: (b, i, 0)),
                pl.BlockSpec((1, tk, Dh), lambda b, i, j: (b, j, 0)),
                pl.BlockSpec((1, tk, Dh), lambda b, i, j: (b, j, 0)),
            ],
            out_specs=pl.BlockSpec((1, tq, Dh), lambda b, i, j: (b, i, 0)),
            scratch_shapes=[
                pltpu.VMEM((tq, 1), jnp.float32),    # running max
                pltpu.VMEM((tq, 1), jnp.float32),    # running denom
                pltpu.VMEM((tq, Dh), jnp.float32),   # output accumulator
            ],
        ),
        compiler_params=pltpu.CompilerParams(
            dimension_semantics=("parallel", "parallel", "arbitrary"),
            vmem_limit_bytes=_VMEM_LIMIT_BYTES,
        ),
    )(q, k, v)


# ----------------------------------------------------------------------------- glue (plain JAX)

def generate_theta(d_model, n_heads, max_length, base_theta=10000.0):
    head_dim = d_model // n_heads
    inv_freq = base_theta ** (-jnp.arange(0, head_dim, 2, dtype=jnp.float32) / head_dim)
    pos = jnp.arange(max_length, dtype=jnp.float32)
    return pos[:, None] * inv_freq[None, :]          # [max_length, head_dim // 2]


def apply_rope(x, cos, sin):
    """x: [B*H, L, Dh] bf16, cos/sin: [L, Dh] f32 (rotate-half convention)."""
    xf = x.astype(jnp.float32)
    half = x.shape[-1] // 2
    xr = jnp.concatenate([-xf[..., half:], xf[..., :half]], axis=-1)
    return (xf * cos[None] + xr * sin[None]).astype(x.dtype)


def block_forward(x2d, p, cos, sin, B, L, n_heads, eps):
    M, D = x2d.shape
    Dh = D // n_heads

    # ---- attention sub-block (pre-norm, fused QKV projection, flash attention) ----
    h = rmsnorm_pallas(x2d, p["ln1_w"], eps)
    qkv = linear_pallas(h, p["w_qkv"], p["b_qkv"])                        # [M, 3D], one HBM read of h
    qkv = qkv.reshape(B, L, 3, n_heads, Dh).transpose(2, 0, 3, 1, 4)      # [3, B, H, L, Dh]
    qkv = qkv.reshape(3, B * n_heads, L, Dh)
    # TODO(synk): fuse RoPE (pltpu.roll) and the head-fold/transpose into the attention kernel
    q = apply_rope(qkv[0], cos, sin)
    k = apply_rope(qkv[1], cos, sin)
    v = qkv[2]
    attn = attention_pallas(q, k, v)                                      # [B*H, L, Dh]
    attn = attn.reshape(B, n_heads, L, Dh).transpose(0, 2, 1, 3).reshape(M, D)
    x2d = linear_pallas(attn, p["wo"], p["bo"], residual=x2d)             # fused residual add

    # ---- MLP sub-block (pre-norm, fused GELU + residual epilogues) ----
    h = rmsnorm_pallas(x2d, p["ln2_w"], eps)
    h = linear_pallas(h, p["w_fc"], p["b_fc"], activation="gelu")         # GELU fused in epilogue
    x2d = linear_pallas(h, p["w_proj"], p["b_proj"], residual=x2d)        # fused residual add
    return x2d


def gpt_forward(tokens, params, theta_full, n_heads, eps):
    B, L = tokens.shape
    x = jnp.take(params["embedding"], tokens, axis=0)     # [B, L, D] bf16 (padding row 0 zeroed)
    D = x.shape[-1]
    x2d = x.reshape(B * L, D)
    theta = theta_full[:L]
    cos = jnp.concatenate([jnp.cos(theta), jnp.cos(theta)], axis=-1)      # [L, Dh] f32
    sin = jnp.concatenate([jnp.sin(theta), jnp.sin(theta)], axis=-1)
    for p in params["layers"]:
        x2d = block_forward(x2d, p, cos, sin, B, L, n_heads, eps)
    logits = linear_pallas(x2d, params["head_w"], params["head_b"], out_dtype=jnp.float32)
    return logits.reshape(B, L, -1)


# ----------------------------------------------------------------------------- params

def init_params(key, vocab_size, d_model, n_layers, n_heads):
    keys = jax.random.split(key, 2 + n_layers)
    emb = 0.02 * jax.random.normal(keys[0], (vocab_size, d_model), jnp.float32)
    emb = emb.at[0].set(0.0)                              # padding_idx=0
    d_ff = 4 * d_model
    s = 0.02

    def layer_params(k):
        ks = jax.random.split(k, 6)
        wq = s * jax.random.normal(ks[0], (d_model, d_model), jnp.float32)
        wk = s * jax.random.normal(ks[1], (d_model, d_model), jnp.float32)
        wv = s * jax.random.normal(ks[2], (d_model, d_model), jnp.float32)
        return {
            "ln1_w": jnp.ones((d_model,), jnp.float32),
            "w_qkv": jnp.concatenate([wq, wk, wv], axis=1).astype(jnp.bfloat16),
            "b_qkv": jnp.zeros((3 * d_model,), jnp.float32),
            "wo": (s * jax.random.normal(ks[3], (d_model, d_model), jnp.float32)).astype(jnp.bfloat16),
            "bo": jnp.zeros((d_model,), jnp.float32),
            "ln2_w": jnp.ones((d_model,), jnp.float32),
            "w_fc": (s * jax.random.normal(ks[4], (d_model, d_ff), jnp.float32)).astype(jnp.bfloat16),
            "b_fc": jnp.zeros((d_ff,), jnp.float32),
            "w_proj": (s * jax.random.normal(ks[5], (d_ff, d_model), jnp.float32)).astype(jnp.bfloat16),
            "b_proj": jnp.zeros((d_model,), jnp.float32),
        }

    layers = [layer_params(keys[2 + i]) for i in range(n_layers)]
    head_w = (0.02 * jax.random.normal(keys[1], (d_model, vocab_size), jnp.float32)).astype(jnp.bfloat16)
    head_b = jnp.zeros((vocab_size,), jnp.float32)
    return {"embedding": emb.astype(jnp.bfloat16), "layers": layers,
            "head_w": head_w, "head_b": head_b}


# ----------------------------------------------------------------------------- main

if __name__ == "__main__":
    vocab_size, d_model, n_layers, n_heads = 64, 32, 2, 4
    max_length, norm_eps, base_theta = 16, 1e-6, 10000.0
    B, L = 2, 8

    key = jax.random.PRNGKey(0)
    k_tok, k_par = jax.random.split(key)
    tokens = jax.random.randint(k_tok, (B, L), 0, vocab_size, dtype=jnp.int32)

    params = init_params(k_par, vocab_size, d_model, n_layers, n_heads)
    theta_full = generate_theta(d_model, n_heads, max_length, base_theta)

    fwd = jax.jit(functools.partial(gpt_forward, n_heads=n_heads, eps=norm_eps))
    logits = fwd(tokens, params, theta_full)
    jax.block_until_ready(logits)

    assert logits.shape == (B, L, vocab_size)
    assert bool(jnp.all(jnp.isfinite(logits)))
    print("KERNEL_OK")
</pallas_src>

<mosaic_0001>
module attributes {stable_mosaic.version = 11 : i64} {
  func.func @_rmsnorm_kernel(%arg0: i32, %arg1: memref<16x32xbf16, #tpu.memory_space<vmem>>, %arg2: memref<1x32xf32, #tpu.memory_space<vmem>>, %arg3: memref<16x32xbf16, #tpu.memory_space<vmem>>) attributes {dimension_semantics = [#tpu.dimension_semantics<parallel>], iteration_bounds = array<i64: 1>, scalar_prefetch = 0 : i64, scratch_operands = 0 : i64, tpu.core_type = #tpu.core_type<tc>, window_params = [{transform_indices = @transform_0, window_bounds = array<i64: 16, 32>}, {pipeline_mode = #tpu.pipeline_mode<synchronous>, transform_indices = @transform_1, window_bounds = array<i64: 1, 32>}, {transform_indices = @transform_2, window_bounds = array<i64: 16, 32>}]} {
    %c0 = arith.constant 0 : index
    %c0_0 = arith.constant 0 : index
    %0 = vector.load %arg1[%c0, %c0_0] : memref<16x32xbf16, #tpu.memory_space<vmem>>, vector<16x32xbf16>
    %1 = arith.extf %0 : vector<16x32xbf16> to vector<16x32xf32>
    %2 = arith.mulf %1, %1 : vector<16x32xf32>
    %cst = arith.constant dense<0.000000e+00> : vector<16xf32>
    %3 = vector.multi_reduction <add>, %2, %cst [1] : vector<16x32xf32> to vector<16xf32>
    %4 = vector.shape_cast %3 : vector<16xf32> to vector<16x1xf32>
    %cst_1 = arith.constant 3.200000e+01 : f32
    %5 = vector.broadcast %cst_1 : f32 to vector<16x1xf32>
    %6 = arith.divf %4, %5 : vector<16x1xf32>
    %cst_2 = arith.constant 9.99999997E-7 : f32
    %7 = vector.broadcast %cst_2 : f32 to vector<16x1xf32>
    %8 = arith.addf %6, %7 : vector<16x1xf32>
    %9 = math.rsqrt %8 : vector<16x1xf32>
    %10 = vector.broadcast %9 : vector<16x1xf32> to vector<16x32xf32>
    %11 = arith.mulf %1, %10 : vector<16x32xf32>
    %c0_3 = arith.constant 0 : index
    %c0_4 = arith.constant 0 : index
    %12 = vector.load %arg2[%c0_3, %c0_4] : memref<1x32xf32, #tpu.memory_space<vmem>>, vector<1x32xf32>
    %13 = vector.broadcast %12 : vector<1x32xf32> to vector<16x32xf32>
    %14 = arith.mulf %11, %13 : vector<16x32xf32>
    %15 = arith.truncf %14 : vector<16x32xf32> to vector<16x32xbf16>
    %c0_5 = arith.constant 0 : index
    %c0_6 = arith.constant 0 : index
    %16 = vector.load %arg3[%c0_5, %c0_6] : memref<16x32xbf16, #tpu.memory_space<vmem>>, vector<16x32xbf16>
    tpu.vector_store %arg3[%c0_5, %c0_6], %15 {strides = array<i32>} : memref<16x32xbf16, #tpu.memory_space<vmem>>, vector<16x32xbf16>,
    return
  }
  func.func @transform_0(%arg0: i32) -> (i32, i32) {
    %c0_i32 = arith.constant 0 : i32
    %c0_i32_0 = arith.constant 0 : i32
    return %arg0, %c0_i32 : i32, i32
  }
  func.func @transform_1(%arg0: i32) -> (i32, i32) {
    %c0_i32 = arith.constant 0 : i32
    %c0_i32_0 = arith.constant 0 : i32
    %c0_i32_1 = arith.constant 0 : i32
    return %c0_i32, %c0_i32_0 : i32, i32
  }
  func.func @transform_2(%arg0: i32) -> (i32, i32) {
    %c0_i32 = arith.constant 0 : i32
    %c0_i32_0 = arith.constant 0 : i32
    return %arg0, %c0_i32 : i32, i32
  }
}

module attributes {stable_mosaic.version = 11 : i64} {
  func.func @_linear_kernel(%arg0: i32, %arg1: i32, %arg2: i32, %arg3: memref<16x32xbf16, #tpu.memory_space<vmem>>, %arg4: memref<32x96xbf16, #tpu.memory_space<vmem>>, %arg5: memref<1x96xf32, #tpu.memory_space<vmem>>, %arg6: memref<16x96xbf16, #tpu.memory_space<vmem>>, %arg7: memref<16x96xf32, #tpu.memory_space<vmem>>) attributes {dimension_semantics = [#tpu.dimension_semantics<parallel>, #tpu.dimension_semantics<parallel>, #tpu.dimension_semantics<arbitrary>], iteration_bounds = array<i64: 1, 1, 1>, scalar_prefetch = 0 : i64, scratch_operands = 1 : i64, tpu.core_type = #tpu.core_type<tc>, window_params = [{transform_indices = @transform_0, window_bounds = array<i64: 16, 32>}, {transform_indices = @transform_1, window_bounds = array<i64: 32, 96>}, {transform_indices = @transform_2, window_bounds = array<i64: 1, 96>}, {transform_indices = @transform_3, window_bounds = array<i64: 16, 96>}]} {
    %c0_i32 = arith.constant 0 : i32
    %0 = arith.cmpi eq, %arg2, %c0_i32 : i32
    %1 = arith.extui %0 : i1 to i32
    %c0_i32_0 = arith.constant 0 : i32
    %2 = arith.cmpi ne, %1, %c0_i32_0 : i32
    scf.if %2 {
      %cst_10 = arith.constant 0.000000e+00 : f32
      %12 = vector.broadcast %cst_10 : f32 to vector<16x96xf32>
      %c0_11 = arith.constant 0 : index
      %c0_12 = arith.constant 0 : index
      %13 = vector.load %arg7[%c0_11, %c0_12] : memref<16x96xf32, #tpu.memory_space<vmem>>, vector<16x96xf32>
      tpu.vector_store %arg7[%c0_11, %c0_12], %12 {strides = array<i32>} : memref<16x96xf32, #tpu.memory_space<vmem>>, vector<16x96xf32>,
    } else {
    }
    %c0 = arith.constant 0 : index
    %c0_1 = arith.constant 0 : index
    %3 = vector.load %arg7[%c0, %c0_1] : memref<16x96xf32, #tpu.memory_space<vmem>>, vector<16x96xf32>
    %c0_2 = arith.constant 0 : index
    %c0_3 = arith.constant 0 : index
    %4 = vector.load %arg3[%c0_2, %c0_3] : memref<16x32xbf16, #tpu.memory_space<vmem>>, vector<16x32xbf16>
    %c0_4 = arith.constant 0 : index
    %c0_5 = arith.constant 0 : index
    %5 = vector.load %arg4[%c0_4, %c0_5] : memref<32x96xbf16, #tpu.memory_space<vmem>>, vector<32x96xbf16>
    %cst = arith.constant dense<0.000000e+00> : vector<16x96xf32>
    %6 = tpu.matmul %4, %5, %cst {dimension_numbers = #tpu.dot_dimension_numbers<[1], [0], [0], [1], [0, 0, 1, 1], [], []>} : vector<16x32xbf16>, vector<32x96xbf16>, vector<16x96xf32> -> vector<16x96xf32>
    %7 = arith.addf %3, %6 : vector<16x96xf32>
    %c0_6 = arith.constant 0 : index
    %c0_7 = arith.constant 0 : index
    %8 = vector.load %arg7[%c0_6, %c0_7] : memref<16x96xf32, #tpu.memory_space<vmem>>, vector<16x96xf32>
    tpu.vector_store %arg7[%c0_6, %c0_7], %7 {strides = array<i32>} : memref<16x96xf32, #tpu.memory_space<vmem>>, vector<16x96xf32>,
    %c0_i32_8 = arith.constant 0 : i32
    %9 = arith.cmpi eq, %arg2, %c0_i32_8 : i32
    %10 = arith.extui %9 : i1 to i32
    %c0_i32_9 = arith.constant 0 : i32
    %11 = arith.cmpi ne, %10, %c0_i32_9 : i32
    scf.if %11 {
      %c0_10 = arith.constant 0 : index
      %c0_11 = arith.constant 0 : index
      %12 = vector.load %arg7[%c0_10, %c0_11] : memref<16x96xf32, #tpu.memory_space<vmem>>, vector<16x96xf32>
      %c0_12 = arith.constant 0 : index
      %c0_13 = arith.constant 0 : index
      %13 = vector.load %arg5[%c0_12, %c0_13] : memref<1x96xf32, #tpu.memory_space<vmem>>, vector<1x96xf32>
      %14 = vector.broadcast %13 : vector<1x96xf32> to vector<16x96xf32>
      %15 = arith.addf %12, %14 : vector<16x96xf32>
      %16 = arith.truncf %15 : vector<16x96xf32> to vector<16x96xbf16>
      %c0_14 = arith.constant 0 : index
      %c0_15 = arith.constant 0 : index
      %17 = vector.load %arg6[%c0_14, %c0_15] : memref<16x96xbf16, #tpu.memory_space<vmem>>, vector<16x96xbf16>
      tpu.vector_store %arg6[%c0_14, %c0_15], %16 {strides = array<i32>} : memref<16x96xbf16, #tpu.memory_space<vmem>>, vector<16x96xbf16>,
    } else {
    }
    return
  }
  func.func @transform_0(%arg0: i32, %arg1: i32, %arg2: i32) -> (i32, i32) {
    %c0_i32 = arith.constant 0 : i32
    return %arg0, %arg2 : i32, i32
  }
  func.func @transform_1(%arg0: i32, %arg1: i32, %arg2: i32) -> (i32, i32) {
    %c0_i32 = arith.constant 0 : i32
    return %arg2, %arg1 : i32, i32
  }
  func.func @transform_2(%arg0: i32, %arg1: i32, %arg2: i32) -> (i32, i32) {
    %c0_i32 = arith.constant 0 : i32
    %c0_i32_0 = arith.constant 0 : i32
    return %c0_i32, %arg1 : i32, i32
  }
  func.func @transform_3(%arg0: i32, %arg1: i32, %arg2: i32) -> (i32, i32) {
    %c0_i32 = arith.constant 0 : i32
    return %arg0, %arg1 : i32, i32
  }
}

module attributes {stable_mosaic.version = 11 : i64} {
  func.func @_flash_attn_kernel(%arg0: i32, %arg1: i32, %arg2: i32, %arg3: memref<1x8x8xbf16, #tpu.memory_space<vmem>>, %arg4: memref<1x8x8xbf16, #tpu.memory_space<vmem>>, %arg5: memref<1x8x8xbf16, #tpu.memory_space<vmem>>, %arg6: memref<1x8x8xbf16, #tpu.memory_space<vmem>>, %arg7: memref<8x1xf32, #tpu.memory_space<vmem>>, %arg8: memref<8x1xf32, #tpu.memory_space<vmem>>, %arg9: memref<8x8xf32, #tpu.memory_space<vmem>>) attributes {dimension_semantics = [#tpu.dimension_semantics<parallel>, #tpu.dimension_semantics<parallel>, #tpu.dimension_semantics<arbitrary>], iteration_bounds = array<i64: 8, 1, 1>, scalar_prefetch = 0 : i64, scratch_operands = 3 : i64, tpu.core_type = #tpu.core_type<tc>, window_params = [{transform_indices = @transform_0, window_bounds = array<i64: 1, 8, 8>}, {transform_indices = @transform_1, window_bounds = array<i64: 1, 8, 8>}, {transform_indices = @transform_2, window_bounds = array<i64: 1, 8, 8>}, {transform_indices = @transform_3, window_bounds = array<i64: 1, 8, 8>}]} {
    %c0_i32 = arith.constant 0 : i32
    %0 = arith.cmpi eq, %arg2, %c0_i32 : i32
    %1 = arith.extui %0 : i1 to i32
    %c0_i32_0 = arith.constant 0 : i32
    %2 = arith.cmpi ne, %1, %c0_i32_0 : i32
    scf.if %2 {
      %cst = arith.constant -1.000000e+30 : f32
      %13 = vector.broadcast %cst : f32 to vector<8x1xf32>
      %c0 = arith.constant 0 : index
      %c0_6 = arith.constant 0 : index
      %14 = vector.load %arg7[%c0, %c0_6] : memref<8x1xf32, #tpu.memory_space<vmem>>, vector<8x1xf32>
      tpu.vector_store %arg7[%c0, %c0_6], %13 {strides = array<i32>} : memref<8x1xf32, #tpu.memory_space<vmem>>, vector<8x1xf32>,
      %cst_7 = arith.constant 0.000000e+00 : f32
      %15 = vector.broadcast %cst_7 : f32 to vector<8x1xf32>
      %c0_8 = arith.constant 0 : index
      %c0_9 = arith.constant 0 : index
      %16 = vector.load %arg8[%c0_8, %c0_9] : memref<8x1xf32, #tpu.memory_space<vmem>>, vector<8x1xf32>
      tpu.vector_store %arg8[%c0_8, %c0_9], %15 {strides = array<i32>} : memref<8x1xf32, #tpu.memory_space<vmem>>, vector<8x1xf32>,
      %cst_10 = arith.constant 0.000000e+00 : f32
      %17 = vector.broadcast %cst_10 : f32 to vector<8x8xf32>
      %c0_11 = arith.constant 0 : index
      %c0_12 = arith.constant 0 : index
      %18 = vector.load %arg9[%c0_11, %c0_12] : memref<8x8xf32, #tpu.memory_space<vmem>>, vector<8x8xf32>
      tpu.vector_store %arg9[%c0_11, %c0_12], %17 {strides = array<i32>} : memref<8x8xf32, #tpu.memory_space<vmem>>, vector<8x8xf32>,
    } else {
    }
    %c8_i32 = arith.constant 8 : i32
    %3 = arith.muli %arg1, %c8_i32 : i32
    %c8_i32_1 = arith.constant 8 : i32
    %4 = arith.muli %arg2, %c8_i32_1 : i32
    %c8_i32_2 = arith.constant 8 : i32
    %5 = arith.addi %3, %c8_i32_2 : i32
    %c1_i32 = arith.constant 1 : i32
    %6 = arith.subi %5, %c1_i32 : i32
    %7 = arith.cmpi sle, %4, %6 : i32
    %8 = arith.extui %7 : i1 to i32
    %c0_i32_3 = arith.constant 0 : i32
    %9 = arith.cmpi ne, %8, %c0_i32_3 : i32
    scf.if %9 {
      %c0 = arith.constant 0 : index
      %c0_6 = arith.constant 0 : index
      %c0_7 = arith.constant 0 : index
      %13 = vector.load %arg3[%c0, %c0_6, %c0_7] : memref<1x8x8xbf16, #tpu.memory_space<vmem>>, vector<1x8x8xbf16>
      %14 = vector.shape_cast %13 : vector<1x8x8xbf16> to vector<8x8xbf16>
      %c0_8 = arith.constant 0 : index
      %c0_9 = arith.constant 0 : index
      %c0_10 = arith.constant 0 : index
      %15 = vector.load %arg4[%c0_8, %c0_9, %c0_10] : memref<1x8x8xbf16, #tpu.memory_space<vmem>>, vector<1x8x8xbf16>
      %16 = vector.shape_cast %15 : vector<1x8x8xbf16> to vector<8x8xbf16>
      %cst = arith.constant dense<0.000000e+00> : vector<8x8xf32>
      %17 = tpu.matmul %14, %16, %cst {dimension_numbers = #tpu.dot_dimension_numbers<[1], [1], [0], [0], [0, 0, 1, 0], [], []>} : vector<8x8xbf16>, vector<8x8xbf16>, vector<8x8xf32> -> vector<8x8xf32>
      %cst_11 = arith.constant 0.353553385 : f32
      %18 = vector.broadcast %cst_11 : f32 to vector<8x8xf32>
      %19 = arith.mulf %17, %18 : vector<8x8xf32>
      %20 = tpu.iota {dimensions = array<i32: 0>} : vector<8x8xi32>
      %21 = vector.broadcast %3 : i32 to vector<8x8xi32>
      %22 = arith.addi %21, %20 : vector<8x8xi32>
      %23 = tpu.iota {dimensions = array<i32: 1>} : vector<8x8xi32>
      %24 = vector.broadcast %4 : i32 to vector<8x8xi32>
      %25 = arith.addi %24, %23 : vector<8x8xi32>
      %26 = arith.cmpi sle, %25, %22 : vector<8x8xi32>
      %cst_12 = arith.constant -1.000000e+30 : f32
      %27 = vector.broadcast %cst_12 : f32 to vector<8x8xf32>
      %28 = arith.select %26, %19, %27 : vector<8x8xi1>, vector<8x8xf32>
      %c0_13 = arith.constant 0 : index
      %c0_14 = arith.constant 0 : index
      %29 = vector.load %arg7[%c0_13, %c0_14] : memref<8x1xf32, #tpu.memory_space<vmem>>, vector<8x1xf32>
      %cst_15 = arith.constant dense<0xFF800000> : vector<8xf32>
      %30 = vector.multi_reduction <maximumf>, %28, %cst_15 [1] : vector<8x8xf32> to vector<8xf32>
      %31 = vector.shape_cast %30 : vector<8xf32> to vector<8x1xf32>
      %32 = arith.maximumf %29, %31 : vector<8x1xf32>
      %33 = arith.subf %29, %32 : vector<8x1xf32>
      %34 = math.exp %33 : vector<8x1xf32>
      %35 = vector.broadcast %32 : vector<8x1xf32> to vector<8x8xf32>
      %36 = arith.subf %28, %35 : vector<8x8xf32>
      %37 = math.exp %36 : vector<8x8xf32>
      %c0_16 = arith.constant 0 : index
      %c0_17 = arith.constant 0 : index
      %38 = vector.load %arg8[%c0_16, %c0_17] : memref<8x1xf32, #tpu.memory_space<vmem>>, vector<8x1xf32>
      %39 = arith.mulf %34, %38 : vector<8x1xf32>
      %cst_18 = arith.constant dense<0.000000e+00> : vector<8xf32>
      %40 = vector.multi_reduction <add>, %37, %cst_18 [1] : vector<8x8xf32> to vector<8xf32>
      %41 = vector.shape_cast %40 : vector<8xf32> to vector<8x1xf32>
      %42 = arith.addf %39, %41 : vector<8x1xf32>
      %c0_19 = arith.constant 0 : index
      %c0_20 = arith.constant 0 : index
      %43 = vector.load %arg8[%c0_19, %c0_20] : memref<8x1xf32, #tpu.memory_space<vmem>>, vector<8x1xf32>
      tpu.vector_store %arg8[%c0_19, %c0_20], %42 {strides = array<i32>} : memref<8x1xf32, #tpu.memory_space<vmem>>, vector<8x1xf32>,
      %c0_21 = arith.constant 0 : index
      %c0_22 = arith.constant 0 : index
      %44 = vector.load %arg9[%c0_21, %c0_22] : memref<8x8xf32, #tpu.memory_space<vmem>>, vector<8x8xf32>
      %45 = vector.broadcast %34 : vector<8x1xf32> to vector<8x8xf32>
      %46 = arith.mulf %45, %44 : vector<8x8xf32>
      %47 = arith.truncf %37 : vector<8x8xf32> to vector<8x8xbf16>
      %c0_23 = arith.constant 0 : index
      %c0_24 = arith.constant 0 : index
      %c0_25 = arith.constant 0 : index
      %48 = vector.load %arg5[%c0_23, %c0_24, %c0_25] : memref<1x8x8xbf16, #tpu.memory_space<vmem>>, vector<1x8x8xbf16>
      %49 = vector.shape_cast %48 : vector<1x8x8xbf16> to vector<8x8xbf16>
      %cst_26 = arith.constant dense<0.000000e+00> : vector<8x8xf32>
      %50 = tpu.matmul %47, %49, %cst_26 {dimension_numbers = #tpu.dot_dimension_numbers<[1], [0], [0], [1], [0, 0, 1, 1], [], []>} : vector<8x8xbf16>, vector<8x8xbf16>, vector<8x8xf32> -> vector<8x8xf32>
      %51 = arith.addf %46, %50 : vector<8x8xf32>
      %c0_27 = arith.constant 0 : index
      %c0_28 = arith.constant 0 : index
      %52 = vector.load %arg9[%c0_27, %c0_28] : memref<8x8xf32, #tpu.memory_space<vmem>>, vector<8x8xf32>
      tpu.vector_store %arg9[%c0_27, %c0_28], %51 {strides = array<i32>} : memref<8x8xf32, #tpu.memory_space<vmem>>, vector<8x8xf32>,
      %c0_29 = arith.constant 0 : index
      %c0_30 = arith.constant 0 : index
      %53 = vector.load %arg7[%c0_29, %c0_30] : memref<8x1xf32, #tpu.memory_space<vmem>>, vector<8x1xf32>
      tpu.vector_store %arg7[%c0_29, %c0_30], %32 {strides = array<i32>} : memref<8x1xf32, #tpu.memory_space<vmem>>, vector<8x1xf32>,
    } else {
    }
    %c0_i32_4 = arith.constant 0 : i32
    %10 = arith.cmpi eq, %arg2, %c0_i32_4 : i32
    %11 = arith.extui %10 : i1 to i32
    %c0_i32_5 = arith.constant 0 : i32
    %12 = arith.cmpi ne, %11, %c0_i32_5 : i32
    scf.if %12 {
      %c0 = arith.constant 0 : index
      %c0_6 = arith.constant 0 : index
      %13 = vector.load %arg8[%c0, %c0_6] : memref<8x1xf32, #tpu.memory_space<vmem>>, vector<8x1xf32>
      %14 = tpu.reciprocal %13 {approx = true} : vector<8x1xf32> -> vector<8x1xf32>
      %c0_7 = arith.constant 0 : index
      %c0_8 = arith.constant 0 : index
      %15 = vector.load %arg9[%c0_7, %c0_8] : memref<8x8xf32, #tpu.memory_space<vmem>>, vector<8x8xf32>
      %16 = vector.broadcast %14 : vector<8x1xf32> to vector<8x8xf32>
      %17 = arith.mulf %15, %16 : vector<8x8xf32>
      %18 = arith.truncf %17 : vector<8x8xf32> to vector<8x8xbf16>
      %c0_9 = arith.constant 0 : index
      %c0_10 = arith.constant 0 : index
      %c0_11 = arith.constant 0 : index
      %19 = vector.load %arg6[%c0_9, %c0_10, %c0_11] : memref<1x8x8xbf16, #tpu.memory_space<vmem>>, vector<1x8x8xbf16>
      %20 = vector.shape_cast %19 : vector<1x8x8xbf16> to vector<8x8xbf16>
      %21 = vector.shape_cast %18 : vector<8x8xbf16> to vector<1x8x8xbf16>
      tpu.vector_store %arg6[%c0_9, %c0_10, %c0_11], %21 {strides = array<i32>} : memref<1x8x8xbf16, #tpu.memory_space<vmem>>, vector<1x8x8xbf16>,
    } else {
    }
    return
  }
  func.func @transform_0(%arg0: i32, %arg1: i32, %arg2: i32) -> (i32, i32, i32) {
    %c0_i32 = arith.constant 0 : i32
    %c0_i32_0 = arith.constant 0 : i32
    return %arg0, %arg1, %c0_i32 : i32, i32, i32
  }
  func.func @transform_1(%arg0: i32, %arg1: i32, %arg2: i32) -> (i32, i32, i32) {
    %c0_i32 = arith.constant 0 : i32
    %c0_i32_0 = arith.constant 0 : i32
    return %arg0, %arg2, %c0_i32 : i32, i32, i32
  }
  func.func @transform_2(%arg0: i32, %arg1: i32, %arg2: i32) -> (i32, i32, i32) {
    %c0_i32 = arith.constant 0 : i32
    %c0_i32_0 = arith.constant 0 : i32
    return %arg0, %arg2, %c0_i32 : i32, i32, i32
  }
  func.func @transform_3(%arg0: i32, %arg1: i32, %arg2: i32) -> (i32, i32, i32) {
    %c0_i32 = arith.constant 0 : i32
    %c0_i32_0 = arith.constant 0 : i32
    return %arg0, %arg1, %c0_i32 : i32, i32, i32
  }
}

module attributes {stable_mosaic.version = 11 : i64} {
  func.func @_linear_residual_kernel(%arg0: i32, %arg1: i32, %arg2: i32, %arg3: memref<16x32xbf16, #tpu.memory_space<vmem>>, %arg4: memref<32x32xbf16, #tpu.memory_space<vmem>>, %arg5: memref<1x32xf32, #tpu.memory_space<vmem>>, %arg6: memref<16x32xbf16, #tpu.memory_space<vmem>>, %arg7: memref<16x32xbf16, #tpu.memory_space<vmem>>, %arg8: memref<16x32xf32, #tpu.memory_space<vmem>>) attributes {dimension_semantics = [#tpu.dimension_semantics<parallel>, #tpu.dimension_semantics<parallel>, #tpu.dimension_semantics<arbitrary>], iteration_bounds = array<i64: 1, 1, 1>, scalar_prefetch = 0 : i64, scratch_operands = 1 : i64, tpu.core_type = #tpu.core_type<tc>, window_params = [{transform_indices = @transform_0, window_bounds = array<i64: 16, 32>}, {transform_indices = @transform_1, window_bounds = array<i64: 32, 32>}, {transform_indices = @transform_2, window_bounds = array<i64: 1, 32>}, {transform_indices = @transform_3, window_bounds = array<i64: 16, 32>}, {transform_indices = @transform_4, window_bounds = array<i64: 16, 32>}]} {
    %c0_i32 = arith.constant 0 : i32
    %0 = arith.cmpi eq, %arg2, %c0_i32 : i32
    %1 = arith.extui %0 : i1 to i32
    %c0_i32_0 = arith.constant 0 : i32
    %2 = arith.cmpi ne, %1, %c0_i32_0 : i32
    scf.if %2 {
      %cst_10 = arith.constant 0.000000e+00 : f32
      %12 = vector.broadcast %cst_10 : f32 to vector<16x32xf32>
      %c0_11 = arith.constant 0 : index
      %c0_12 = arith.constant 0 : index
      %13 = vector.load %arg8[%c0_11, %c0_12] : memref<16x32xf32, #tpu.memory_space<vmem>>, vector<16x32xf32>
      tpu.vector_store %arg8[%c0_11, %c0_12], %12 {strides = array<i32>} : memref<16x32xf32, #tpu.memory_space<vmem>>, vector<16x32xf32>,
    } else {
    }
    %c0 = arith.constant 0 : index
    %c0_1 = arith.constant 0 : index
    %3 = vector.load %arg8[%c0, %c0_1] : memref<16x32xf32, #tpu.memory_space<vmem>>, vector<16x32xf32>
    %c0_2 = arith.constant 0 : index
    %c0_3 = arith.constant 0 : index
    %4 = vector.load %arg3[%c0_2, %c0_3] : memref<16x32xbf16, #tpu.memory_space<vmem>>, vector<16x32xbf16>
    %c0_4 = arith.constant 0 : index
    %c0_5 = arith.constant 0 : index
    %5 = vector.load %arg4[%c0_4, %c0_5] : memref<32x32xbf16, #tpu.memory_space<vmem>>, vector<32x32xbf16>
    %cst = arith.constant dense<0.000000e+00> : vector<16x32xf32>
    %6 = tpu.matmul %4, %5, %cst {dimension_numbers = #tpu.dot_dimension_numbers<[1], [0], [0], [1], [0, 0, 1, 1], [], []>} : vector<16x32xbf16>, vector<32x32xbf16>, vector<16x32xf32> -> vector<16x32xf32>
    %7 = arith.addf %3, %6 : vector<16x32xf32>
    %c0_6 = arith.constant 0 : index
    %c0_7 = arith.constant 0 : index
    %8 = vector.load %arg8[%c0_6, %c0_7] : memref<16x32xf32, #tpu.memory_space<vmem>>, vector<16x32xf32>
    tpu.vector_store %arg8[%c0_6, %c0_7], %7 {strides = array<i32>} : memref<16x32xf32, #tpu.memory_space<vmem>>, vector<16x32xf32>,
    %c0_i32_8 = arith.constant 0 : i32
    %9 = arith.cmpi eq, %arg2, %c0_i32_8 : i32
    %10 = arith.extui %9 : i1 to i32
    %c0_i32_9 = arith.constant 0 : i32
    %11 = arith.cmpi ne, %10, %c0_i32_9 : i32
    scf.if %11 {
      %c0_10 = arith.constant 0 : index
      %c0_11 = arith.constant 0 : index
      %12 = vector.load %arg8[%c0_10, %c0_11] : memref<16x32xf32, #tpu.memory_space<vmem>>, vector<16x32xf32>
      %c0_12 = arith.constant 0 : index
      %c0_13 = arith.constant 0 : index
      %13 = vector.load %arg5[%c0_12, %c0_13] : memref<1x32xf32, #tpu.memory_space<vmem>>, vector<1x32xf32>
      %14 = vector.broadcast %13 : vector<1x32xf32> to vector<16x32xf32>
      %15 = arith.addf %12, %14 : vector<16x32xf32>
      %c0_14 = arith.constant 0 : index
      %c0_15 = arith.constant 0 : index
      %16 = vector.load %arg6[%c0_14, %c0_15] : memref<16x32xbf16, #tpu.memory_space<vmem>>, vector<16x32xbf16>
      %17 = arith.extf %16 : vector<16x32xbf16> to vector<16x32xf32>
      %18 = arith.addf %15, %17 : vector<16x32xf32>
      %19 = arith.truncf %18 : vector<16x32xf32> to vector<16x32xbf16>
      %c0_16 = arith.constant 0 : index
      %c0_17 = arith.constant 0 : index
      %20 = vector.load %arg7[%c0_16, %c0_17] : memref<16x32xbf16, #tpu.memory_space<vmem>>, vector<16x32xbf16>
      tpu.vector_store %arg7[%c0_16, %c0_17], %19 {strides = array<i32>} : memref<16x32xbf16, #tpu.memory_space<vmem>>, vector<16x32xbf16>,
    } else {
    }
    return
  }
  func.func @transform_0(%arg0: i32, %arg1: i32, %arg2: i32) -> (i32, i32) {
    %c0_i32 = arith.constant 0 : i32
    return %arg0, %arg2 : i32, i32
  }
  func.func @transform_1(%arg0: i32, %arg1: i32, %arg2: i32) -> (i32, i32) {
    %c0_i32 = arith.constant 0 : i32
    return %arg2, %arg1 : i32, i32
  }
  func.func @transform_2(%arg0: i32, %arg1: i32, %arg2: i32) -> (i32, i32) {
    %c0_i32 = arith.constant 0 : i32
    %c0_i32_0 = arith.constant 0 : i32
    return %c0_i32, %arg1 : i32, i32
  }
  func.func @transform_3(%arg0: i32, %arg1: i32, %arg2: i32) -> (i32, i32) {
    %c0_i32 = arith.constant 0 : i32
    return %arg0, %arg1 : i32, i32
  }
  func.func @transform_4(%arg0: i32, %arg1: i32, %arg2: i32) -> (i32, i32) {
    %c0_i32 = arith.constant 0 : i32
    return %arg0, %arg1 : i32, i32
  }
}

module attributes {stable_mosaic.version = 11 : i64} {
  func.func @_linear_residual_kernel(%arg0: i32, %arg1: i32, %arg2: i32, %arg3: memref<16x128xbf16, #tpu.memory_space<vmem>>, %arg4: memref<128x32xbf16, #tpu.memory_space<vmem>>, %arg5: memref<1x32xf32, #tpu.memory_space<vmem>>, %arg6: memref<16x32xbf16, #tpu.memory_space<vmem>>, %arg7: memref<16x32xbf16, #tpu.memory_space<vmem>>, %arg8: memref<16x32xf32, #tpu.memory_space<vmem>>) attributes {dimension_semantics = [#tpu.dimension_semantics<parallel>, #tpu.dimension_semantics<parallel>, #tpu.dimension_semantics<arbitrary>], iteration_bounds = array<i64: 1, 1, 1>, scalar_prefetch = 0 : i64, scratch_operands = 1 : i64, tpu.core_type = #tpu.core_type<tc>, window_params = [{transform_indices = @transform_0, window_bounds = array<i64: 16, 128>}, {transform_indices = @transform_1, window_bounds = array<i64: 128, 32>}, {transform_indices = @transform_2, window_bounds = array<i64: 1, 32>}, {transform_indices = @transform_3, window_bounds = array<i64: 16, 32>}, {transform_indices = @transform_4, window_bounds = array<i64: 16, 32>}]} {
    %c0_i32 = arith.constant 0 : i32
    %0 = arith.cmpi eq, %arg2, %c0_i32 : i32
    %1 = arith.extui %0 : i1 to i32
    %c0_i32_0 = arith.constant 0 : i32
    %2 = arith.cmpi ne, %1, %c0_i32_0 : i32
    scf.if %2 {
      %cst_10 = arith.constant 0.000000e+00 : f32
      %12 = vector.broadcast %cst_10 : f32 to vector<16x32xf32>
      %c0_11 = arith.constant 0 : index
      %c0_12 = arith.constant 0 : index
      %13 = vector.load %arg8[%c0_11, %c0_12] : memref<16x32xf32, #tpu.memory_space<vmem>>, vector<16x32xf32>
      tpu.vector_store %arg8[%c0_11, %c0_12], %12 {strides = array<i32>} : memref<16x32xf32, #tpu.memory_space<vmem>>, vector<16x32xf32>,
    } else {
    }
    %c0 = arith.constant 0 : index
    %c0_1 = arith.constant 0 : index
    %3 = vector.load %arg8[%c0, %c0_1] : memref<16x32xf32, #tpu.memory_space<vmem>>, vector<16x32xf32>
    %c0_2 = arith.constant 0 : index
    %c0_3 = arith.constant 0 : index
    %4 = vector.load %arg3[%c0_2, %c0_3] : memref<16x128xbf16, #tpu.memory_space<vmem>>, vector<16x128xbf16>
    %c0_4 = arith.constant 0 : index
    %c0_5 = arith.constant 0 : index
    %5 = vector.load %arg4[%c0_4, %c0_5] : memref<128x32xbf16, #tpu.memory_space<vmem>>, vector<128x32xbf16>
    %cst = arith.constant dense<0.000000e+00> : vector<16x32xf32>
    %6 = tpu.matmul %4, %5, %cst {dimension_numbers = #tpu.dot_dimension_numbers<[1], [0], [0], [1], [0, 0, 1, 1], [], []>} : vector<16x128xbf16>, vector<128x32xbf16>, vector<16x32xf32> -> vector<16x32xf32>
    %7 = arith.addf %3, %6 : vector<16x32xf32>
    %c0_6 = arith.constant 0 : index
    %c0_7 = arith.constant 0 : index
    %8 = vector.load %arg8[%c0_6, %c0_7] : memref<16x32xf32, #tpu.memory_space<vmem>>, vector<16x32xf32>
    tpu.vector_store %arg8[%c0_6, %c0_7], %7 {strides = array<i32>} : memref<16x32xf32, #tpu.memory_space<vmem>>, vector<16x32xf32>,
    %c0_i32_8 = arith.constant 0 : i32
    %9 = arith.cmpi eq, %arg2, %c0_i32_8 : i32
    %10 = arith.extui %9 : i1 to i32
    %c0_i32_9 = arith.constant 0 : i32
    %11 = arith.cmpi ne, %10, %c0_i32_9 : i32
    scf.if %11 {
      %c0_10 = arith.constant 0 : index
      %c0_11 = arith.constant 0 : index
      %12 = vector.load %arg8[%c0_10, %c0_11] : memref<16x32xf32, #tpu.memory_space<vmem>>, vector<16x32xf32>
      %c0_12 = arith.constant 0 : index
      %c0_13 = arith.constant 0 : index
      %13 = vector.load %arg5[%c0_12, %c0_13] : memref<1x32xf32, #tpu.memory_space<vmem>>, vector<1x32xf32>
      %14 = vector.broadcast %13 : vector<1x32xf32> to vector<16x32xf32>
      %15 = arith.addf %12, %14 : vector<16x32xf32>
      %c0_14 = arith.constant 0 : index
      %c0_15 = arith.constant 0 : index
      %16 = vector.load %arg6[%c0_14, %c0_15] : memref<16x32xbf16, #tpu.memory_space<vmem>>, vector<16x32xbf16>
      %17 = arith.extf %16 : vector<16x32xbf16> to vector<16x32xf32>
      %18 = arith.addf %15, %17 : vector<16x32xf32>
      %19 = arith.truncf %18 : vector<16x32xf32> to vector<16x32xbf16>
      %c0_16 = arith.constant 0 : index
      %c0_17 = arith.constant 0 : index
      %20 = vector.load %arg7[%c0_16, %c0_17] : memref<16x32xbf16, #tpu.memory_space<vmem>>, vector<16x32xbf16>
      tpu.vector_store %arg7[%c0_16, %c0_17], %19 {strides = array<i32>} : memref<16x32xbf16, #tpu.memory_space<vmem>>, vector<16x32xbf16>,
    } else {
    }
    return
  }
  func.func @transform_0(%arg0: i32, %arg1: i32, %arg2: i32) -> (i32, i32) {
    %c0_i32 = arith.constant 0 : i32
    return %arg0, %arg2 : i32, i32
  }
  func.func @transform_1(%arg0: i32, %arg1: i32, %arg2: i32) -> (i32, i32) {
    %c0_i32 = arith.constant 0 : i32
    return %arg2, %arg1 : i32, i32
  }
  func.func @transform_2(%arg0: i32, %arg1: i32, %arg2: i32) -> (i32, i32) {
    %c0_i32 = arith.constant 0 : i32
    %c0_i32_0 = arith.constant 0 : i32
    return %c0_i32, %arg1 : i32, i32
  }
  func.func @transform_3(%arg0: i32, %arg1: i32, %arg2: i32) -> (i32, i32) {
    %c0_i32 = arith.constant 0 : i32
    return %arg0, %arg1 : i32, i32
  }
  func.func @transform_4(%arg0: i32, %arg1: i32, %arg2: i32) -> (i32, i32) {
    %c0_i32 = arith.constant 0 : i32
    return %arg0, %arg1 : i32, i32
  }
}

module attributes {stable_mosaic.version = 11 : i64} {
  func.func @_linear_kernel(%arg0: i32, %arg1: i32, %arg2: i32, %arg3: memref<16x32xbf16, #tpu.memory_space<vmem>>, %arg4: memref<32x128xbf16, #tpu.memory_space<vmem>>, %arg5: memref<1x128xf32, #tpu.memory_space<vmem>>, %arg6: memref<16x128xbf16, #tpu.memory_space<vmem>>, %arg7: memref<16x128xf32, #tpu.memory_space<vmem>>) attributes {dimension_semantics = [#tpu.dimension_semantics<parallel>, #tpu.dimension_semantics<parallel>, #tpu.dimension_semantics<arbitrary>], iteration_bounds = array<i64: 1, 1, 1>, scalar_prefetch = 0 : i64, scratch_operands = 1 : i64, tpu.core_type = #tpu.core_type<tc>, window_params = [{transform_indices = @transform_0, window_bounds = array<i64: 16, 32>}, {transform_indices = @transform_1, window_bounds = array<i64: 32, 128>}, {transform_indices = @transform_2, window_bounds = array<i64: 1, 128>}, {transform_indices = @transform_3, window_bounds = array<i64: 16, 128>}]} {
    %c0_i32 = arith.constant 0 : i32
    %0 = arith.cmpi eq, %arg2, %c0_i32 : i32
    %1 = arith.extui %0 : i1 to i32
    %c0_i32_0 = arith.constant 0 : i32
    %2 = arith.cmpi ne, %1, %c0_i32_0 : i32
    scf.if %2 {
      %cst_10 = arith.constant 0.000000e+00 : f32
      %12 = vector.broadcast %cst_10 : f32 to vector<16x128xf32>
      %c0_11 = arith.constant 0 : index
      %c0_12 = arith.constant 0 : index
      %13 = vector.load %arg7[%c0_11, %c0_12] : memref<16x128xf32, #tpu.memory_space<vmem>>, vector<16x128xf32>
      tpu.vector_store %arg7[%c0_11, %c0_12], %12 {strides = array<i32>} : memref<16x128xf32, #tpu.memory_space<vmem>>, vector<16x128xf32>,
    } else {
    }
    %c0 = arith.constant 0 : index
    %c0_1 = arith.constant 0 : index
    %3 = vector.load %arg7[%c0, %c0_1] : memref<16x128xf32, #tpu.memory_space<vmem>>, vector<16x128xf32>
    %c0_2 = arith.constant 0 : index
    %c0_3 = arith.constant 0 : index
    %4 = vector.load %arg3[%c0_2, %c0_3] : memref<16x32xbf16, #tpu.memory_space<vmem>>, vector<16x32xbf16>
    %c0_4 = arith.constant 0 : index
    %c0_5 = arith.constant 0 : index
    %5 = vector.load %arg4[%c0_4, %c0_5] : memref<32x128xbf16, #tpu.memory_space<vmem>>, vector<32x128xbf16>
    %cst = arith.constant dense<0.000000e+00> : vector<16x128xf32>
    %6 = tpu.matmul %4, %5, %cst {dimension_numbers = #tpu.dot_dimension_numbers<[1], [0], [0], [1], [0, 0, 1, 1], [], []>} : vector<16x32xbf16>, vector<32x128xbf16>, vector<16x128xf32> -> vector<16x128xf32>
    %7 = arith.addf %3, %6 : vector<16x128xf32>
    %c0_6 = arith.constant 0 : index
    %c0_7 = arith.constant 0 : index
    %8 = vector.load %arg7[%c0_6, %c0_7] : memref<16x128xf32, #tpu.memory_space<vmem>>, vector<16x128xf32>
    tpu.vector_store %arg7[%c0_6, %c0_7], %7 {strides = array<i32>} : memref<16x128xf32, #tpu.memory_space<vmem>>, vector<16x128xf32>,
    %c0_i32_8 = arith.constant 0 : i32
    %9 = arith.cmpi eq, %arg2, %c0_i32_8 : i32
    %10 = arith.extui %9 : i1 to i32
    %c0_i32_9 = arith.constant 0 : i32
    %11 = arith.cmpi ne, %10, %c0_i32_9 : i32
    scf.if %11 {
      %c0_10 = arith.constant 0 : index
      %c0_11 = arith.constant 0 : index
      %12 = vector.load %arg7[%c0_10, %c0_11] : memref<16x128xf32, #tpu.memory_space<vmem>>, vector<16x128xf32>
      %c0_12 = arith.constant 0 : index
      %c0_13 = arith.constant 0 : index
      %13 = vector.load %arg5[%c0_12, %c0_13] : memref<1x128xf32, #tpu.memory_space<vmem>>, vector<1x128xf32>
      %14 = vector.broadcast %13 : vector<1x128xf32> to vector<16x128xf32>
      %15 = arith.addf %12, %14 : vector<16x128xf32>
      %16 = arith.mulf %15, %15 : vector<16x128xf32>
      %17 = arith.mulf %15, %16 : vector<16x128xf32>
      %cst_14 = arith.constant 4.471500e-02 : f32
      %18 = vector.broadcast %cst_14 : f32 to vector<16x128xf32>
      %19 = arith.mulf %18, %17 : vector<16x128xf32>
      %20 = arith.addf %15, %19 : vector<16x128xf32>
      %cst_15 = arith.constant 0.797884583 : f32
      %21 = vector.broadcast %cst_15 : f32 to vector<16x128xf32>
      %22 = arith.mulf %21, %20 : vector<16x128xf32>
      %23 = math.tanh %22 : vector<16x128xf32>
      %cst_16 = arith.constant 1.000000e+00 : f32
      %24 = vector.broadcast %cst_16 : f32 to vector<16x128xf32>
      %25 = arith.addf %24, %23 : vector<16x128xf32>
      %cst_17 = arith.constant 5.000000e-01 : f32
      %26 = vector.broadcast %cst_17 : f32 to vector<16x128xf32>
      %27 = arith.mulf %26, %25 : vector<16x128xf32>
      %28 = arith.mulf %15, %27 : vector<16x128xf32>
      %29 = arith.truncf %28 : vector<16x128xf32> to vector<16x128xbf16>
      %c0_18 = arith.constant 0 : index
      %c0_19 = arith.constant 0 : index
      %30 = vector.load %arg6[%c0_18, %c0_19] : memref<16x128xbf16, #tpu.memory_space<vmem>>, vector<16x128xbf16>
      tpu.vector_store %arg6[%c0_18, %c0_19], %29 {strides = array<i32>} : memref<16x128xbf16, #tpu.memory_space<vmem>>, vector<16x128xbf16>,
    } else {
    }
    return
  }
  func.func @transform_0(%arg0: i32, %arg1: i32, %arg2: i32) -> (i32, i32) {
    %c0_i32 = arith.constant 0 : i32
    return %arg0, %arg2 : i32, i32
  }
  func.func @transform_1(%arg0: i32, %arg1: i32, %arg2: i32) -> (i32, i32) {
    %c0_i32 = arith.constant 0 : i32
    return %arg2, %arg1 : i32, i32
  }
  func.func @transform_2(%arg0: i32, %arg1: i32, %arg2: i32) -> (i32, i32) {
    %c0_i32 = arith.constant 0 : i32
    %c0_i32_0 = arith.constant 0 : i32
    return %c0_i32, %arg1 : i32, i32
  }
  func.func @transform_3(%arg0: i32, %arg1: i32, %arg2: i32) -> (i32, i32) {
    %c0_i32 = arith.constant 0 : i32
    return %arg0, %arg1 : i32, i32
  }
}

module attributes {stable_mosaic.version = 11 : i64} {
  func.func @_linear_kernel(%arg0: i32, %arg1: i32, %arg2: i32, %arg3: memref<16x32xbf16, #tpu.memory_space<vmem>>, %arg4: memref<32x64xbf16, #tpu.memory_space<vmem>>, %arg5: memref<1x64xf32, #tpu.memory_space<vmem>>, %arg6: memref<16x64xf32, #tpu.memory_space<vmem>>, %arg7: memref<16x64xf32, #tpu.memory_space<vmem>>) attributes {dimension_semantics = [#tpu.dimension_semantics<parallel>, #tpu.dimension_semantics<parallel>, #tpu.dimension_semantics<arbitrary>], iteration_bounds = array<i64: 1, 1, 1>, scalar_prefetch = 0 : i64, scratch_operands = 1 : i64, tpu.core_type = #tpu.core_type<tc>, window_params = [{transform_indices = @transform_0, window_bounds = array<i64: 16, 32>}, {transform_indices = @transform_1, window_bounds = array<i64: 32, 64>}, {transform_indices = @transform_2, window_bounds = array<i64: 1, 64>}, {transform_indices = @transform_3, window_bounds = array<i64: 16, 64>}]} {
    %c0_i32 = arith.constant 0 : i32
    %0 = arith.cmpi eq, %arg2, %c0_i32 : i32
    %1 = arith.extui %0 : i1 to i32
    %c0_i32_0 = arith.constant 0 : i32
    %2 = arith.cmpi ne, %1, %c0_i32_0 : i32
    scf.if %2 {
      %cst_10 = arith.constant 0.000000e+00 : f32
      %12 = vector.broadcast %cst_10 : f32 to vector<16x64xf32>
      %c0_11 = arith.constant 0 : index
      %c0_12 = arith.constant 0 : index
      %13 = vector.load %arg7[%c0_11, %c0_12] : memref<16x64xf32, #tpu.memory_space<vmem>>, vector<16x64xf32>
      tpu.vector_store %arg7[%c0_11, %c0_12], %12 {strides = array<i32>} : memref<16x64xf32, #tpu.memory_space<vmem>>, vector<16x64xf32>,
    } else {
    }
    %c0 = arith.constant 0 : index
    %c0_1 = arith.constant 0 : index
    %3 = vector.load %arg7[%c0, %c0_1] : memref<16x64xf32, #tpu.memory_space<vmem>>, vector<16x64xf32>
    %c0_2 = arith.constant 0 : index
    %c0_3 = arith.constant 0 : index
    %4 = vector.load %arg3[%c0_2, %c0_3] : memref<16x32xbf16, #tpu.memory_space<vmem>>, vector<16x32xbf16>
    %c0_4 = arith.constant 0 : index
    %c0_5 = arith.constant 0 : index
    %5 = vector.load %arg4[%c0_4, %c0_5] : memref<32x64xbf16, #tpu.memory_space<vmem>>, vector<32x64xbf16>
    %cst = arith.constant dense<0.000000e+00> : vector<16x64xf32>
    %6 = tpu.matmul %4, %5, %cst {dimension_numbers = #tpu.dot_dimension_numbers<[1], [0], [0], [1], [0, 0, 1, 1], [], []>} : vector<16x32xbf16>, vector<32x64xbf16>, vector<16x64xf32> -> vector<16x64xf32>
    %7 = arith.addf %3, %6 : vector<16x64xf32>
    %c0_6 = arith.constant 0 : index
    %c0_7 = arith.constant 0 : index
    %8 = vector.load %arg7[%c0_6, %c0_7] : memref<16x64xf32, #tpu.memory_space<vmem>>, vector<16x64xf32>
    tpu.vector_store %arg7[%c0_6, %c0_7], %7 {strides = array<i32>} : memref<16x64xf32, #tpu.memory_space<vmem>>, vector<16x64xf32>,
    %c0_i32_8 = arith.constant 0 : i32
    %9 = arith.cmpi eq, %arg2, %c0_i32_8 : i32
    %10 = arith.extui %9 : i1 to i32
    %c0_i32_9 = arith.constant 0 : i32
    %11 = arith.cmpi ne, %10, %c0_i32_9 : i32
    scf.if %11 {
      %c0_10 = arith.constant 0 : index
      %c0_11 = arith.constant 0 : index
      %12 = vector.load %arg7[%c0_10, %c0_11] : memref<16x64xf32, #tpu.memory_space<vmem>>, vector<16x64xf32>
      %c0_12 = arith.constant 0 : index
      %c0_13 = arith.constant 0 : index
      %13 = vector.load %arg5[%c0_12, %c0_13] : memref<1x64xf32, #tpu.memory_space<vmem>>, vector<1x64xf32>
      %14 = vector.broadcast %13 : vector<1x64xf32> to vector<16x64xf32>
      %15 = arith.addf %12, %14 : vector<16x64xf32>
      %c0_14 = arith.constant 0 : index
      %c0_15 = arith.constant 0 : index
      %16 = vector.load %arg6[%c0_14, %c0_15] : memref<16x64xf32, #tpu.memory_space<vmem>>, vector<16x64xf32>
      tpu.vector_store %arg6[%c0_14, %c0_15], %15 {strides = array<i32>} : memref<16x64xf32, #tpu.memory_space<vmem>>, vector<16x64xf32>,
    } else {
    }
    return
  }
  func.func @transform_0(%arg0: i32, %arg1: i32, %arg2: i32) -> (i32, i32) {
    %c0_i32 = arith.constant 0 : i32
    return %arg0, %arg2 : i32, i32
  }
  func.func @transform_1(%arg0: i32, %arg1: i32, %arg2: i32) -> (i32, i32) {
    %c0_i32 = arith.constant 0 : i32
    return %arg2, %arg1 : i32, i32
  }
  func.func @transform_2(%arg0: i32, %arg1: i32, %arg2: i32) -> (i32, i32) {
    %c0_i32 = arith.constant 0 : i32
    %c0_i32_0 = arith.constant 0 : i32
    return %c0_i32, %arg1 : i32, i32
  }
  func.func @transform_3(%arg0: i32, %arg1: i32, %arg2: i32) -> (i32, i32) {
    %c0_i32 = arith.constant 0 : i32
    return %arg0, %arg1 : i32, i32
  }
}

</mosaic_0001>

<bundles_post_ra>
// kernel: gpt_forward.15
= control target key start
LH: loop header
LB: loop body
LE: loop exit
PB: predicated region body
PF: predicated region fallthrough
CT: control target
= control target key end

     0   :  { %vm17_vm0 = vcmask 261120   ;;  %vm50_vm1 = vcmask 257024   ;;  %s97_s0 = inlined_call_operand.vmem [shape: bf16[16,32], index: 0, kind: input, shape index: {}]   ;;  %s98_s1 = inlined_call_operand.vmem [shape: f32[1,32], index: 1, kind: input, shape index: {}]   ;;  %s99_s2 = inlined_call_operand.vmem [shape: bf16[16,32], index: 2, kind: output, shape index: {}]  }
   0x1   :  { %v63_v0 = vld [vmem:[%s97_s0] sm:$0xff]  }
   0x2   :  { %v64_v1 = vunpack.c.l.bf16 %v63_v0  ;;  %v65_v2 = vunpack.c.h.bf16 %v63_v0  ;;  %v57_v14 = vld [vmem:[%s98_s1] ss:$0 sm:$0xff] }
   0x4   :  { %v15_v3 = vmul.f32 %v64_v1, %v64_v1  ;;  %v16_v4 = vmul.f32 %v65_v2, %v65_v2 }
   0x6   :  { %v18_v5 = vsel %vm17_vm0, %v15_v3, 0.0  ;;  %v21_v6 = vsel %vm17_vm0, %v16_v4, 0.0 }
   0x7   :  { %19 = vadd.xlane.f32.xlu0 %v18_v5 }
   0xb   :  { %22 = vadd.xlane.f32.xlu0 %v21_v6 }
  0x90   :  { %v20_v7 = vpop.xlane.xlu0 %19 }
  0x91   :  { %v25_v8 = vmul.f32 0.03125, %v20_v7 }
  0x93   :  { %v27_v9 = vadd.f32 1e-06, %v25_v8 }
  0x94   :  { %v23_v10 = vpop.xlane.xlu0 %22 }
  0x95   :  { %66 = vrsqrt.f32 %v27_v9  ;;  %v26_v11 = vmul.f32 0.03125, %v23_v10 }
  0x97   :  { %v28_v12 = vadd.f32 1e-06, %v26_v11 }
  0x99   :  { %68 = vrsqrt.f32 %v28_v12 }
  0xa2   :  { %v67_v13 = vpop.eup %66 }
  0xa3   :  { %v31_v15 = vmul.f32 %v67_v13, %v64_v1 }
  0xa5   :  { %v40_v16 = vmul.f32 %v57_v14, %v31_v15 }
  0xa6   :  { %v69_v17 = vpop.eup %68 }
  0xa7   :  { %v60_v18 = vpack.c.bf16 %v40_v16, %v40_v16  ;;  %v32_v19 = vmul.f32 %v69_v17, %v65_v2 }
  0xa9   :  { %51 = vst.msk [vmem:[%s99_s2] sm:$0xf] %vm50_vm1, %v60_v18  ;;  %v41_v20 = vmul.f32 %v57_v14, %v32_v19 }
  0xab   :  { %v61_v21 = vpack.c.bf16 %v41_v20, %v41_v20 }
  0xad   :  { %52 = vst.msk [vmem:[%s99_s2 + $0x4] sm:$0xf] %vm50_vm1, %v61_v21 }

// kernel: gpt_forward.16
= control target key start
LH: loop header
LB: loop body
LE: loop exit
PB: predicated region body
PF: predicated region fallthrough
CT: control target
= control target key end

     0   :  { %vm19_vm0 = vcmask 785408   ;;  %v151_v0 = vmov 0.0   ;;  %vm152_vm1 = vmmov 0   ;;  %vm47_vm2 = vcmask 261120   ;;  %s195_s1 = inlined_call_operand.vmem [shape: bf16[32,96], index: 1, kind: input, shape index: {}]   ;;  %s196_s0 = inlined_call_operand.vmem [shape: bf16[16,32], index: 0, kind: input, shape index: {}]   ;;  %s197_s2 = inlined_call_operand.vmem [shape: f32[1,96], index: 2, kind: input, shape index: {}]   ;;  %s198_s3 = inlined_call_operand.vmem [shape: bf16[16,96], index: 3, kind: output, shape index: {}]  }
   0x1   :  { %138 = vmatprep.subr.bf16.mxu0 %v151_v0  ;;  %v148_v1 = vld [vmem:[%s195_s1 + $0x8] sm:$0xff]   ;;  %142 = vmatprep.mubr.msk.bf16.mxu0 %vm152_vm1, %v151_v0  ;;  %20 = vst.msk [vmem:[#allocation2] sm:$0xff] %vm19_vm0, %v151_v0  ;;  %21 = vst.msk [vmem:[#allocation2 + $0x8] sm:$0xff] %vm19_vm0, %v151_v0  ;;  %v149_v2 = vld [vmem:[%s195_s1] sm:$0xff]   ;;  %vm119_vm3 = vcmask 781312  }
   0x2   :  { %139 = vmatpush3.bf16.msra.mxu0 %v148_v1  ;;  %v150_v3 = vld [vmem:[%s196_s0] sm:$0xff]  }
   0x3   :  { %140 = vmatprep.subr.bf16.mxu0 %v151_v0  ;;  %v130_v12 = vld [vmem:[%s197_s2] ss:$0 sm:$0xff] }
   0x6   :  { %141 = vmatpush3.bf16.msra.mxu0 %v149_v2 }
   0x8   :  { %v22_v4 = vld [vmem:[#allocation2] sm:$0xff]  ;;  %v23_v8 = vld [vmem:[#allocation2 + $0x8] sm:$0xff] }
   0x9   :  { %143 = vmatmul.mubr.msk.bf16.vlgmr.msra.gmra.mxu0 %vm47_vm2, %v150_v3 }
  0xc9   :  { %v85_v5 = vpop.f32.mrf.mxu0 }
  0xca   :  { %v92_v6 = vadd.f32 %v85_v5, %v22_v4 }
  0xcb   :  { %v144_v7 = vpop.f32.mrf.mxu0 }
  0xcc   :  { %95 = vst.msk [vmem:[#allocation2] sm:$0xff] %vm19_vm0, %v92_v6 }
  0xcd   :  { %v88_v9 = vpop.f32.mrf.mxu0 }
  0xce   :  { %v93_v10 = vadd.f32 %v88_v9, %v23_v8 }
  0xcf   :  { %v145_v11 = vpop.f32.mrf.mxu0 }
  0xd0   :  { %96 = vst.msk [vmem:[#allocation2 + $0x8] sm:$0xff] %vm19_vm0, %v93_v10 }
  0xd3   :  { %v100_v13 = vld [vmem:[#allocation2] sm:$0xff] }
  0xd4   :  { %v109_v14 = vadd.f32 %v130_v12, %v100_v13 }
  0xd6   :  { %v133_v15 = vpack.c.bf16 %v109_v14, %v109_v14 }
  0xd7   :  { %v101_v16 = vld [vmem:[#allocation2 + $0x8] sm:$0xff] }
  0xd8   :  { %120 = vst.msk [vmem:[%s198_s3] sm:$0xf] %vm119_vm3, %v133_v15  ;;  %v110_v17 = vadd.f32 %v130_v12, %v101_v16 }
  0xda   :  { %v134_v18 = vpack.c.bf16 %v110_v17, %v110_v17 }
  0xdc   :  { %121 = vst.msk [vmem:[%s198_s3 + $0x4] sm:$0xf] %vm119_vm3, %v134_v18 }

// kernel: gpt_forward.17
= control target key start
LH: loop header
LB: loop body
LE: loop exit
PB: predicated region body
PF: predicated region fallthrough
CT: control target
= control target key end

     0   :  { %s655_s12 = smov 0   ;;  %s657_s13 = smov 0   ;;  %s711_s0 = inlined_call_operand.vmem [shape: bf16[8,8,8], index: 0, kind: input, shape index: {}]   ;;  %s712_s1 = inlined_call_operand.vmem [shape: bf16[8,8,8], index: 1, kind: input, shape index: {}]   ;;  %s713_s2 = inlined_call_operand.vmem [shape: bf16[8,8,8], index: 2, kind: input, shape index: {}]   ;;  %s714_s3 = inlined_call_operand.vmem [shape: bf16[8,8,8], index: 3, kind: output, shape index: {}]  }
   0x1   :  { %s659_s14 = smov 0  }
   0x2 LB: > { %s32_s15 = sadd.s32 1, %s625_s13  ;;  %p546_p0 = scmp.ge.s32.totalorder %s629_s14, 1  ;;  %s629_s14 = sphi %s659_s14, %s13_s14   ;;  %s625_s13 = sphi %s657_s13, %s716_s13   ;;  %s621_s12 = sphi %s655_s12, %s715_s12  }
   0x3   : > { %p34_p1 = scmp.ge.s32.totalorder %s32_s15, 8  ;;  %p190_p2 = scmp.lt.s32.totalorder %s629_s14, 9 }
   0x5   : > { %s718_s15 = smov (%p34_p1, %s32_s15), 0  ;;  %p191_p3 = pnand %p546_p0, %p190_p2 }
   0x6   : > { %p232_p4 = scmp.lt.s32.totalorder (!%p191_p3), %s621_s12, 7 }
   0x7   : > { %194 = sbr.rel (%p191_p3) target bundleno = 795 (0x31b), region = 32 }
   0xc   : > { %vm268_vm0 = vcmask 64512   ;;  %v631_v0 = vmov 0.0   ;;  %vm632_vm1 = vmmov 0   ;;  %s720_s12 = smov (!%p232_p4, %s621_s12), 7  ;;  %vm265_vm2 = vcmask 7168  }
   0xd   : > { %559 = vmatprep.subr.bf16.mxu0 %v631_v0  ;;  %269 = vst.msk [vmem:[#allocation4] sm:$0xff] %vm268_vm0, %v631_v0  ;;  %561 = vmatprep.mubr.msk.bf16.mxu0 %vm632_vm1, %v631_v0  ;;  %s674_s16 = sshll.u32 %s720_s12, 2  ;;  %v633_v4 = vmov -1e+30   ;;  %v327_v5 = vlaneseq  ;;  %v634_v15 = vmov 0   ;;  %vm373_vm4 = vcmask 1043456  }
   0xe   : > { %565 = vmatprep.subr.bf16.mxu1 %v631_v0  ;;  %567 = vmatprep.mubr.msk.bf16.mxu1 %vm632_vm1, %v631_v0  ;;  %s245_s19 = scalar_lea.vmem %s712_s1, %s674_s16  ;;  %s238_s22 = scalar_lea.vmem %s711_s0, %s674_s16  ;;  %266 = vst.msk [vmem:[#allocation2] sm:$0xff] %vm265_vm2, %v633_v4  ;;  %267 = vst.msk [vmem:[#allocation3] sm:$0xff] %vm265_vm2, %v631_v0  ;;  %vm433_vm5 = vcmask 60416  }
   0xf   : > { %v278_v1 = vld [vmem:[%s245_s19] sm:$0xf]  ;;  %v328_v6 = vshrl.u32 %v327_v5, 7  ;;  %v332_v7 = vand.u32 127, %v327_v5  ;;  %599 = vset.pattern.permute.xlu0 %v634_v15  ;;  %600 = vset.pattern.permute.xlu1 %v634_v15  ;;  %s252_s25 = scalar_lea.vmem %s713_s2, %s674_s16  ;;  %s259_s28 = scalar_lea.vmem %s714_s3, %s674_s16 }
  0x10   : > { %v284_v2 = vsel %vm268_vm0, %v278_v1, 0  ;;  %v277_v3 = vld [vmem:[%s238_s22] sm:$0xf] }
  0x11   : > { %560 = vmatpush3.bf16.xpose.msra.mxu0 %v284_v2  ;;  %vm335_vm3 = vcmp.le.s32.totalorder %v332_v7, %v328_v6  ;;  %v369_v20 = vld [vmem:[%s252_s25] sm:$0xf] }
  0x12   : > { %v375_v21 = vsel %vm373_vm4, %v369_v20, 0 }
  0x13   : > { %566 = vmatpush3.bf16.msra.mxu1 %v375_v21 }
  0x14   : > { %v361_v36 = vld [vmem:[#allocation4] sm:$0xff] }
  0x15   : > { %v337_v16 = vld [vmem:[#allocation2] sm:$0xff]  ;;  %v353_v30 = vld [vmem:[#allocation3] sm:$0xff] }
  0x18   : > { %562 = vmatmul.mubr.msk.bf16.vlgmr.msra.gmra.mxu0 %vm268_vm0, %v277_v3 }
  0xd8   : > { %v320_v8 = vpop.f32.mrf.mxu0 }
  0xd9   : > { %v326_v9 = vmul.f32 0.35355338, %v320_v8 }
  0xda   : > { %v563_v10 = vpop.f32.mrf.mxu0 }
  0xdb   : > { %v336_v11 = vsel %vm335_vm3, %v326_v9, -1e+30 }
  0xdc   : > { %v323_v12 = vpop.f32.mrf.mxu0  ;;  %v338_v13 = vsel %vm268_vm0, %v336_v11, -inf }
  0xdd   : > { %339 = vmax.xlane.f32.xlu0 %v338_v13 }
  0xde   : > { %v564_v14 = vpop.f32.mrf.mxu0 }
 0x166   : > { %v340_v17 = vpop.xlane.xlu0 %339 }
 0x167   : > { %v341_v18 = vmax.f32 %v337_v16, %v340_v17 }
 0x169   : > { %v342_v19 = vsub.f32 %v337_v16, %v341_v18  ;;  %419 = vst.msk [vmem:[#allocation2] sm:$0xff] %vm265_vm2, %v341_v18  ;;  %347 = vperm.xlu0 %599, %v341_v18  }
 0x16b   : > { %v343_v26 = vmul.f32 1.442695, %v342_v19 }
 0x1e4   : > { %v348_v22 = vpop.permute.xlu0 %347 }
 0x1e5   : > { %v350_v23 = vsub.f32 %v336_v11, %v348_v22 }
 0x1e7   : > { %v351_v24 = vmul.f32 1.442695, %v350_v23 }
 0x1e9   : > { %601 = vpow2.f32 %v351_v24 }
 0x1ea   : > { %603 = vpow2.f32 %v343_v26 }
 0x1f6   : > { %v602_v25 = vpop.eup %601 }
 0x1f7   : > { %v355_v27 = vsel %vm268_vm0, %v602_v25, 0.0  ;;  %v368_v28 = vpack.c.bf16 %v602_v25, %v602_v25  ;;  %v604_v29 = vpop.eup %603 }
 0x1f8   : > { %356 = vadd.xlane.f32.xlu1 %v355_v27  ;;  %v354_v31 = vmul.f32 %v604_v29, %v353_v30 }
 0x1f9   : > { %568 = vmatmul.mubr.msk.bf16.vlgmr.msra.gmra.mxu1 %vm268_vm0, %v368_v28 }
 0x209   : > { %364 = vperm.xlu1 %600, %v604_v29  }
 0x281   : > { %v357_v32 = vpop.xlane.xlu1 %356 }
 0x282   : > { %v358_v33 = vadd.f32 %v357_v32, %v354_v31 }
 0x284   : > { %360 = vst.msk [vmem:[#allocation3] sm:$0xff] %vm265_vm2, %v358_v33 }
 0x285   : > { %v365_v37 = vpop.permute.xlu1 %364 }
 0x286   : > { %v367_v38 = vmul.f32 %v365_v37, %v361_v36 }
 0x28b   : > { %v423_v34 = vld [vmem:[#allocation3] sm:$0xff] }
 0x28c   : > { %605 = vrcp.f32 %v423_v34 }
 0x299   : > { %v606_v35 = vpop.eup %605 }
 0x29a   : > { %428 = vperm.xlu1 %600, %v606_v35  }
 0x2b9   : > { %v411_v39 = vpop.f32.mrf.mxu1 }
 0x2ba   : > { %v417_v40 = vadd.f32 %v411_v39, %v367_v38 }
 0x2bb   : > { %v569_v41 = vpop.f32.mrf.mxu1 }
 0x2bc   : > { %418 = vst.msk [vmem:[#allocation4] sm:$0xff] %vm268_vm0, %v417_v40 }
 0x2bd   : > { %v414_v42 = vpop.f32.mrf.mxu1 }
 0x2bf   : > { %v570_v43 = vpop.f32.mrf.mxu1 }
 0x2c3   : > { %v425_v44 = vld [vmem:[#allocation4] sm:$0xff] }
 0x315   : > { %v429_v45 = vpop.permute.xlu1 %428 }
 0x316   : > { %v431_v46 = vmul.f32 %v429_v45, %v425_v44 }
 0x318   : > { %v432_v47 = vpack.c.bf16 %v431_v46, %v431_v46 }
 0x31a   : > { %434 = vst.msk [vmem:[%s259_s28] sm:$0xf] %vm433_vm5, %v432_v47 }
 0x31b PF: > { %s13_s14 = sadd.s32 1, %s629_s14   ;;  %s715_s12 = smov %s625_s13 }
 0x31c   : > { %p10_p5 = scmp.ge.s32.totalorder %s13_s14, 10   ;;  %s716_s13 = smov %s718_s15 }
 0x31e   :  { %12 = sbr.rel (!%p10_p5) target bundleno = 2 (0x2), region = 80 }

// kernel: gpt_forward.18
= control target key start
LH: loop header
LB: loop body
LE: loop exit
PB: predicated region body
PF: predicated region fallthrough
CT: control target
= control target key end

     0   :  { %vm22_vm0 = vcmask 261120   ;;  %v163_v0 = vmov 0.0   ;;  %vm164_vm1 = vmmov 0   ;;  %vm127_vm2 = vcmask 257024   ;;  %s216_s1 = inlined_call_operand.vmem [shape: bf16[32,32], index: 1, kind: input, shape index: {}]   ;;  %s217_s0 = inlined_call_operand.vmem [shape: bf16[16,32], index: 0, kind: input, shape index: {}]   ;;  %s218_s3 = inlined_call_operand.vmem [shape: bf16[16,32], index: 3, kind: input, shape index: {}]   ;;  %s219_s2 = inlined_call_operand.vmem [shape: f32[1,32], index: 2, kind: input, shape index: {}]   ;;  %s220_s4 = inlined_call_operand.vmem [shape: bf16[16,32], index: 4, kind: output, shape index: {}]  }
   0x1   :  { %150 = vmatprep.subr.bf16.mxu0 %v163_v0  ;;  %v160_v1 = vld [vmem:[%s216_s1 + $0x8] sm:$0xff]   ;;  %154 = vmatprep.mubr.msk.bf16.mxu0 %vm164_vm1, %v163_v0  ;;  %23 = vst.msk [vmem:[#allocation2] sm:$0xff] %vm22_vm0, %v163_v0  ;;  %24 = vst.msk [vmem:[#allocation2 + $0x8] sm:$0xff] %vm22_vm0, %v163_v0  ;;  %v161_v2 = vld [vmem:[%s216_s1] sm:$0xff]  }
   0x2   :  { %151 = vmatpush3.bf16.msra.mxu0 %v160_v1  ;;  %v162_v3 = vld [vmem:[%s217_s0] sm:$0xff]  }
   0x3   :  { %152 = vmatprep.subr.bf16.mxu0 %v163_v0  ;;  %v144_v11 = vld [vmem:[%s218_s3] sm:$0xff]  }
   0x4   :  { %v138_v13 = vld [vmem:[%s219_s2] ss:$0 sm:$0xff]  ;;  %v145_v14 = vunpack.c.l.bf16 %v144_v11  ;;  %v146_v18 = vunpack.c.h.bf16 %v144_v11 }
   0x6   :  { %153 = vmatpush3.bf16.msra.mxu0 %v161_v2 }
   0x8   :  { %v25_v4 = vld [vmem:[#allocation2] sm:$0xff]  ;;  %v26_v8 = vld [vmem:[#allocation2 + $0x8] sm:$0xff] }
   0x9   :  { %155 = vmatmul.mubr.msk.bf16.vlgmr.msra.gmra.mxu0 %vm22_vm0, %v162_v3 }
  0xc9   :  { %v88_v5 = vpop.f32.mrf.mxu0 }
  0xca   :  { %v95_v6 = vadd.f32 %v88_v5, %v25_v4 }
  0xcb   :  { %v156_v7 = vpop.f32.mrf.mxu0 }
  0xcc   :  { %97 = vst.msk [vmem:[#allocation2] sm:$0xff] %vm22_vm0, %v95_v6 }
  0xcd   :  { %v91_v9 = vpop.f32.mrf.mxu0 }
  0xce   :  { %v96_v10 = vadd.f32 %v91_v9, %v26_v8 }
  0xcf   :  { %v157_v12 = vpop.f32.mrf.mxu0 }
  0xd0   :  { %98 = vst.msk [vmem:[#allocation2 + $0x8] sm:$0xff] %vm22_vm0, %v96_v10 }
  0xd3   :  { %v102_v15 = vld [vmem:[#allocation2] sm:$0xff] }
  0xd4   :  { %v111_v16 = vadd.f32 %v138_v13, %v102_v15 }
  0xd6   :  { %v117_v17 = vadd.f32 %v145_v14, %v111_v16 }
  0xd7   :  { %v103_v19 = vld [vmem:[#allocation2 + $0x8] sm:$0xff] }
  0xd8   :  { %v141_v20 = vpack.c.bf16 %v117_v17, %v117_v17  ;;  %v112_v21 = vadd.f32 %v138_v13, %v103_v19 }
  0xda   :  { %128 = vst.msk [vmem:[%s220_s4] sm:$0xf] %vm127_vm2, %v141_v20  ;;  %v118_v22 = vadd.f32 %v146_v18, %v112_v21 }
  0xdc   :  { %v142_v23 = vpack.c.bf16 %v118_v22, %v118_v22 }
  0xde   :  { %129 = vst.msk [vmem:[%s220_s4 + $0x4] sm:$0xf] %vm127_vm2, %v142_v23 }

// kernel: gpt_forward.21
= control target key start
LH: loop header
LB: loop body
LE: loop exit
PB: predicated region body
PF: predicated region fallthrough
CT: control target
= control target key end

     0   :  { %vm22_vm0 = vcmask 261120   ;;  %v238_v0 = vmov 0.0   ;;  %vm239_vm1 = vmmov 0   ;;  %vm173_vm2 = vcmask 257024   ;;  %s308_s1 = inlined_call_operand.vmem [shape: bf16[128,32], index: 1, kind: input, shape index: {}]   ;;  %s309_s0 = inlined_call_operand.vmem [shape: bf16[16,128], index: 0, kind: input, shape index: {}]   ;;  %s310_s3 = inlined_call_operand.vmem [shape: bf16[16,32], index: 3, kind: input, shape index: {}]   ;;  %s311_s2 = inlined_call_operand.vmem [shape: f32[1,32], index: 2, kind: input, shape index: {}]   ;;  %s312_s4 = inlined_call_operand.vmem [shape: bf16[16,32], index: 4, kind: output, shape index: {}]  }
   0x1   :  { %207 = vmatprep.subr.bf16.mxu0 %v238_v0  ;;  %v229_v1 = vld [vmem:[%s308_s1 + $0x38] sm:$0xff]   ;;  %223 = vmatprep.mubr.msk.bf16.mxu0 %vm239_vm1, %v238_v0  ;;  %23 = vst.msk [vmem:[#allocation2] sm:$0xff] %vm22_vm0, %v238_v0  ;;  %24 = vst.msk [vmem:[#allocation2 + $0x8] sm:$0xff] %vm22_vm0, %v238_v0  ;;  %v230_v2 = vld [vmem:[%s308_s1 + $0x30] sm:$0xff]  }
   0x2   :  { %208 = vmatpush3.bf16.msra.mxu0 %v229_v1  ;;  %v231_v3 = vld [vmem:[%s308_s1 + $0x28] sm:$0xff]   ;;  %v232_v4 = vld [vmem:[%s308_s1 + $0x20] sm:$0xff]   ;;  %v233_v5 = vld [vmem:[%s308_s1 + $0x18] sm:$0xff]  }
   0x3   :  { %209 = vmatprep.subr.bf16.mxu0 %v238_v0  ;;  %v234_v6 = vld [vmem:[%s308_s1 + $0x10] sm:$0xff]   ;;  %v235_v7 = vld [vmem:[%s308_s1 + $0x8] sm:$0xff]   ;;  %v236_v8 = vld [vmem:[%s308_s1] sm:$0xff]  }
   0x4   :  { %v237_v9 = vld [vmem:[%s309_s0] sm:$0xff]  }
   0x5   :  { %v195_v17 = vld [vmem:[%s310_s3] sm:$0xff]  }
   0x6   :  { %210 = vmatpush3.bf16.msra.mxu0 %v230_v2  ;;  %v189_v19 = vld [vmem:[%s311_s2] ss:$0 sm:$0xff]  ;;  %v196_v20 = vunpack.c.l.bf16 %v195_v17  ;;  %v197_v24 = vunpack.c.h.bf16 %v195_v17 }
   0x7   :  { %211 = vmatprep.subr.bf16.mxu0 %v238_v0 }
   0x8   :  { %v25_v10 = vld [vmem:[#allocation2] sm:$0xff]  ;;  %v26_v14 = vld [vmem:[#allocation2 + $0x8] sm:$0xff] }
   0xa   :  { %212 = vmatpush3.bf16.msra.mxu0 %v231_v3 }
   0xb   :  { %213 = vmatprep.subr.bf16.mxu0 %v238_v0 }
   0xe   :  { %214 = vmatpush3.bf16.msra.mxu0 %v232_v4 }
   0xf   :  { %215 = vmatprep.subr.bf16.mxu0 %v238_v0 }
  0x12   :  { %216 = vmatpush3.bf16.msra.mxu0 %v233_v5 }
  0x13   :  { %217 = vmatprep.subr.bf16.mxu0 %v238_v0 }
  0x16   :  { %218 = vmatpush3.bf16.msra.mxu0 %v234_v6 }
  0x17   :  { %219 = vmatprep.subr.bf16.mxu0 %v238_v0 }
  0x1a   :  { %220 = vmatpush3.bf16.msra.mxu0 %v235_v7 }
  0x1b   :  { %221 = vmatprep.subr.bf16.mxu0 %v238_v0 }
  0x1e   :  { %222 = vmatpush3.bf16.msra.mxu0 %v236_v8 }
  0x21   :  { %224 = vmatmul.mubr.bf16.vlgmr.msra.gmra.mxu0 %v237_v9 }
  0xe1   :  { %v133_v11 = vpop.f32.mrf.mxu0 }
  0xe2   :  { %v140_v12 = vadd.f32 %v133_v11, %v25_v10 }
  0xe3   :  { %v225_v13 = vpop.f32.mrf.mxu0 }
  0xe4   :  { %143 = vst.msk [vmem:[#allocation2] sm:$0xff] %vm22_vm0, %v140_v12 }
  0xe5   :  { %v136_v15 = vpop.f32.mrf.mxu0 }
  0xe6   :  { %v141_v16 = vadd.f32 %v136_v15, %v26_v14 }
  0xe7   :  { %v226_v18 = vpop.f32.mrf.mxu0 }
  0xe8   :  { %144 = vst.msk [vmem:[#allocation2 + $0x8] sm:$0xff] %vm22_vm0, %v141_v16 }
  0xeb   :  { %v148_v21 = vld [vmem:[#allocation2] sm:$0xff] }
  0xec   :  { %v157_v22 = vadd.f32 %v189_v19, %v148_v21 }
  0xee   :  { %v163_v23 = vadd.f32 %v196_v20, %v157_v22 }
  0xef   :  { %v149_v25 = vld [vmem:[#allocation2 + $0x8] sm:$0xff] }
  0xf0   :  { %v192_v26 = vpack.c.bf16 %v163_v23, %v163_v23  ;;  %v158_v27 = vadd.f32 %v189_v19, %v149_v25 }
  0xf2   :  { %174 = vst.msk [vmem:[%s312_s4] sm:$0xf] %vm173_vm2, %v192_v26  ;;  %v164_v28 = vadd.f32 %v197_v24, %v158_v27 }
  0xf4   :  { %v193_v29 = vpack.c.bf16 %v164_v28, %v164_v28 }
  0xf6   :  { %175 = vst.msk [vmem:[%s312_s4 + $0x4] sm:$0xf] %vm173_vm2, %v193_v29 }

// kernel: gpt_forward.20
= control target key start
LH: loop header
LB: loop body
LE: loop exit
PB: predicated region body
PF: predicated region fallthrough
CT: control target
= control target key end

     0   :  { %v175_v0 = vmov 0.0   ;;  %vm176_vm0 = vmmov 0   ;;  %vm46_vm1 = vcmask 261120   ;;  %s212_s1 = inlined_call_operand.vmem [shape: bf16[32,128], index: 1, kind: input, shape index: {}]   ;;  %s213_s0 = inlined_call_operand.vmem [shape: bf16[16,32], index: 0, kind: input, shape index: {}]   ;;  %s214_s2 = inlined_call_operand.vmem [shape: f32[1,128], index: 2, kind: input, shape index: {}]   ;;  %s215_s3 = inlined_call_operand.vmem [shape: bf16[16,128], index: 3, kind: output, shape index: {}]  }
   0x1   :  { %158 = vmatprep.subr.bf16.mxu0 %v175_v0  ;;  %v168_v1 = vld [vmem:[%s212_s1 + $0x8] sm:$0xff]   ;;  %162 = vmatprep.mubr.msk.bf16.mxu0 %vm176_vm0, %v175_v0  ;;  %v169_v2 = vld [vmem:[%s212_s1] sm:$0xff]  }
   0x2   :  { %159 = vmatpush3.bf16.msra.mxu0 %v168_v1  ;;  %v170_v3 = vld [vmem:[%s213_s0] sm:$0xff]  }
   0x3   :  { %160 = vmatprep.subr.bf16.mxu0 %v175_v0  ;;  %v145_v4 = vld [vmem:[%s214_s2] ss:$0 sm:$0xff] }
   0x6   :  { %161 = vmatpush3.bf16.msra.mxu0 %v169_v2 }
   0x9   :  { %163 = vmatmul.mubr.msk.bf16.vlgmr.msra.gmra.mxu0 %vm46_vm1, %v170_v3 }
  0xc9   :  { %v84_v5 = vpop.f32.mrf.mxu0 }
  0xca   :  { %v107_v6 = vadd.f32 %v145_v4, %v84_v5 }
  0xcb   :  { %v164_v7 = vpop.f32.mrf.mxu0 }
  0xcc   :  { %v109_v8 = vmul.f32 %v107_v6, %v107_v6 }
  0xcd   :  { %v87_v9 = vpop.f32.mrf.mxu0 }
  0xce   :  { %v111_v10 = vmul.f32 %v109_v8, %v107_v6  ;;  %v108_v11 = vadd.f32 %v145_v4, %v87_v9 }
  0xcf   :  { %v165_v12 = vpop.f32.mrf.mxu0 }
  0xd0   :  { %v113_v13 = vmul.f32 0.044715, %v111_v10  ;;  %v110_v14 = vmul.f32 %v108_v11, %v108_v11 }
  0xd2   :  { %v115_v15 = vadd.f32 %v113_v13, %v107_v6  ;;  %v112_v16 = vmul.f32 %v110_v14, %v108_v11 }
  0xd4   :  { %v117_v17 = vmul.f32 0.7978846, %v115_v15  ;;  %v114_v18 = vmul.f32 0.044715, %v112_v16 }
  0xd6   :  { %171 = vtanh.f32 %v117_v17  ;;  %v116_v19 = vadd.f32 %v114_v18, %v108_v11 }
  0xd8   :  { %v118_v20 = vmul.f32 0.7978846, %v116_v19 }
  0xda   :  { %173 = vtanh.f32 %v118_v20 }
  0xe3   :  { %v172_v21 = vpop.eup %171 }
  0xe4   :  { %v121_v22 = vadd.f32 1.0, %v172_v21 }
  0xe6   :  { %v123_v24 = vmul.f32 0.5, %v121_v22 }
  0xe7   :  { %v174_v23 = vpop.eup %173 }
  0xe8   :  { %v122_v25 = vadd.f32 1.0, %v174_v23  ;;  %v125_v27 = vmul.f32 %v123_v24, %v107_v6 }
  0xea   :  { %v124_v26 = vmul.f32 0.5, %v122_v25 }
  0xec   :  { %v126_v28 = vmul.f32 %v124_v26, %v108_v11 }
  0xee   :  { %v153_v29 = vpack.c.bf16 %v126_v28, %v125_v27 }
  0xf0   :  { %154 = vst [vmem:[%s215_s3] sm:$0xff] %v153_v29  }

// kernel: gpt_forward.29
= control target key start
LH: loop header
LB: loop body
LE: loop exit
PB: predicated region body
PF: predicated region fallthrough
CT: control target
= control target key end

     0   :  { %v176_v1 = vmov 0.0   ;;  %vm177_vm0 = vmmov 0   ;;  %vm20_vm1 = vcmask 523264   ;;  %s222_s0 = inlined_call_operand.vmem [shape: bf16[16,32], index: 0, kind: input, shape index: {}]   ;;  %s223_s1 = inlined_call_operand.vmem [shape: bf16[32,64], index: 1, kind: input, shape index: {}]   ;;  %s224_s2 = inlined_call_operand.vmem [shape: f32[1,64], index: 2, kind: input, shape index: {}]   ;;  %s225_s3 = inlined_call_operand.hbm [shape: f32[16,64], index: 3, kind: output, shape index: {}]  }
   0x1   :  { %v151_v0 = vld [vmem:[%s223_s1 + $0x8] sm:$0xff]   ;;  %138 = vmatprep.subr.bf16.mxu0 %v176_v1  ;;  %v152_v2 = vld [vmem:[%s223_s1] sm:$0xff]   ;;  %142 = vmatprep.mubr.msk.bf16.mxu0 %vm177_vm0, %v176_v1 }
   0x2   :  { %139 = vmatpush3.bf16.msra.mxu0 %v151_v0 }
   0x3   :  { %140 = vmatprep.subr.bf16.mxu0 %v176_v1 }
   0x4   :  { %8 = vsyncpa [#allocation4], 0  ;;  %21 = vst.msk [vmem:[#allocation2] sm:$0xff] %vm20_vm1, %v176_v1  ;;  %v153_v3 = vld [vmem:[%s222_s0] sm:$0xff]   ;;  %vm48_vm2 = vcmask 261120   ;;  %s178_s0 = smov [#allocation3]  }
   0x5   :  { %22 = vst.msk [vmem:[#allocation2 + $0x8] sm:$0xff] %vm20_vm1, %v176_v1  ;;  %v134_v12 = vld [vmem:[%s224_s2] ss:$0 sm:$0xff]  ;;  %s119_s19 = sshll.u32 %s178_s0, 4  ;;  %s120_s19 = int_to_ptr.vmem [resolvable:$true] %s119_s19 }
   0x6   :  { %141 = vmatpush3.bf16.msra.mxu0 %v152_v2  ;;  %s154_s20 = scalar_lea.vmem %s120_s19, 256  ;;  %p159_p1 = scmp.lt.s32.totalorder %s120_s19, %s120_s19 }
   0x7   :  { %p155_p0 = scmp.ne.s32.totalorder %s120_s19, %s154_s20  ;;  %p160_p2 = scmp.lt.s32.totalorder %s154_s20, %s154_s20 }
   0x9   :  { %143 = vmatmul.mubr.msk.bf16.vlgmr.msra.gmra.mxu0 %vm48_vm2, %v153_v3  ;;  %p161_p3 = por %p160_p2, %p159_p1 }
   0xb   :  { %v23_v4 = vld [vmem:[#allocation2] sm:$0xff]  ;;  %p162_p4 = pnand %p161_p3, %p155_p0 }
   0xc   :  { %v24_v8 = vld [vmem:[#allocation2 + $0x8] sm:$0xff] }
  0xc9   :  { %v86_v5 = vpop.f32.mrf.mxu0 }
  0xca   :  { %v93_v6 = vadd.f32 %v86_v5, %v23_v4 }
  0xcb   :  { %v144_v7 = vpop.f32.mrf.mxu0 }
  0xcc   :  { %96 = vst.msk [vmem:[#allocation2] sm:$0xff] %vm20_vm1, %v93_v6 }
  0xcd   :  { %v89_v9 = vpop.f32.mrf.mxu0 }
  0xce   :  { %v94_v10 = vadd.f32 %v89_v9, %v24_v8 }
  0xcf   :  { %v145_v11 = vpop.f32.mrf.mxu0 }
  0xd0   :  { %97 = vst.msk [vmem:[#allocation2 + $0x8] sm:$0xff] %vm20_vm1, %v94_v10 }
  0xd3   :  { %v101_v13 = vld [vmem:[#allocation2] sm:$0xff] }
  0xd4   :  { %v110_v14 = vadd.f32 %v134_v12, %v101_v13 }
  0xd6   :  { %112 = vst.msk [vmem:[#allocation3] sm:$0xff] %vm20_vm1, %v110_v14 }
  0xd7   :  { %v102_v15 = vld [vmem:[#allocation2 + $0x8] sm:$0xff] }
  0xd8   :  { %v111_v16 = vadd.f32 %v134_v12, %v102_v15 }
  0xda   :  { %113 = vst.msk [vmem:[#allocation3 + $0x8] sm:$0xff] %vm20_vm1, %v111_v16 }
  0xdb   :  { %165 = shalt.err (!%p162_p4)
}
  0xdc   :  { %s179_s21 = smov 128   ;;  %s180_s2 = smov 8  }
  0xdd   :  { %125 = dma.vmem_to_hbm [thread:$0]  %s120_s19, 256, %s225_s3, [#allocation4], %s179_s21, %s179_s21, %s180_s2  }
  0xde   :  { %174 = dma.done.wait [#allocation4], 256  }
  0xdf   :  { %175 = vsyncadd [#allocation4], 4294967040 }
  0xe0   :  { %129 = vsyncpa [#allocation4], 1 }

</bundles_post_ra>
